<compile_context>
chip_gen: v5e
topology: v5e:2x2
jax: 0.10.0
libtpu: 0.0.40
codegen_flags: <defaults>
</compile_context>

<pallas_src>
import functools

import jax
import jax.numpy as jnp
from jax import lax
from jax.experimental import pallas as pl
from jax.experimental.pallas import tpu as pltpu


def dwsep_kernel(x_ref, wdw_ref, bdw_ref, wpw_ref, bpw_ref, o_ref, *, K, Wp, Lp):
    """One image per grid step.

    x_ref:   (1, C, Lp)    zero-padded image, spatial flattened on lanes
    wdw_ref: (C, K*K)      depthwise weights
    bdw_ref: (C, 1)        depthwise bias
    wpw_ref: (Cout, C)     pointwise weights
    bpw_ref: (Cout, 1)     pointwise bias
    o_ref:   (1, Cout, Lp) output on the padded flat grid (wrapper slices)
    """
    x = x_ref[0]                               # (C, Lp)
    wdw = wdw_ref[...]                         # (C, K*K)

    # ---- depthwise KxK conv: shift-and-MAC via lane rolls (XLU) ----
    # acc[c, i] = sum_t x[c, i + kh*Wp + kw] * wdw[c, t];  valid outputs sit at
    # flat indices i = h*Wp + w (h < H_out, w < W_out), where no roll-wrap or
    # row-wrap can reach (wrapper guarantees Lp >= Hp*Wp).
    acc = x * wdw[:, 0:1]
    for t in range(1, K * K):
        kh, kw = divmod(t, K)
        s = kh * Wp + kw
        acc = acc + pltpu.roll(x, shift=Lp - s, axis=1) * wdw[:, t:t + 1]
    acc = acc + bdw_ref[...]                   # (C, 1) lane-broadcast bias

    # ---- pointwise 1x1 conv on the MXU: (Cout, C) @ (C, Lp) ----
    out = jnp.dot(wpw_ref[...], acc, preferred_element_type=jnp.float32)
    o_ref[0] = out + bpw_ref[...]


def dwsep_conv2d(x_nchw, params, *, kernel_size=7, padding=3):
    """DepthwiseSeparableConv2d forward (stride=1, dilation=1, zero padding)."""
    N, C, H, W = x_nchw.shape
    K = kernel_size
    Cout = params["w_pw"].shape[0]

    Hp = H + 2 * padding
    Wp = W + 2 * padding
    H_out = Hp - (K - 1)
    W_out = Wp - (K - 1)
    Lp = Hp * Wp
    Lp_pad = pl.cdiv(Lp, 128) * 128            # lane-dense flat length

    x = x_nchw.astype(jnp.float32)
    xp = jnp.pad(x, ((0, 0), (0, 0), (padding, padding), (padding, padding)))
    xflat = xp.reshape(N, C, Lp)
    if Lp_pad > Lp:
        xflat = jnp.pad(xflat, ((0, 0), (0, 0), (0, Lp_pad - Lp)))

    wdw = params["w_dw"].reshape(C, K * K).astype(jnp.float32)
    bdw = params["b_dw"].reshape(C, 1).astype(jnp.float32)
    wpw = params["w_pw"].reshape(Cout, C).astype(jnp.float32)
    bpw = params["b_pw"].reshape(Cout, 1).astype(jnp.float32)

    kernel = functools.partial(dwsep_kernel, K=K, Wp=Wp, Lp=Lp_pad)

    out_flat = pl.pallas_call(
        kernel,
        out_shape=jax.ShapeDtypeStruct((N, Cout, Lp_pad), jnp.float32),
        grid_spec=pltpu.PrefetchScalarGridSpec(
            num_scalar_prefetch=0,
            grid=(N,),
            in_specs=[
                pl.BlockSpec((1, C, Lp_pad), lambda n: (n, 0, 0)),   # padded x
                pl.BlockSpec((C, K * K), lambda n: (0, 0)),          # dw weight
                pl.BlockSpec((C, 1), lambda n: (0, 0)),              # dw bias
                pl.BlockSpec((Cout, C), lambda n: (0, 0)),           # pw weight
                pl.BlockSpec((Cout, 1), lambda n: (0, 0)),           # pw bias
            ],
            out_specs=pl.BlockSpec((1, Cout, Lp_pad), lambda n: (n, 0, 0)),
        ),
        compiler_params=pltpu.CompilerParams(
            dimension_semantics=("parallel",)),
    )(xflat, wdw, bdw, wpw, bpw)

    # Valid-region extraction (cheap XLA slice on the small output).
    out = out_flat[:, :, :Lp].reshape(N, Cout, Hp, Wp)[:, :, :H_out, :W_out]
    return out


def dwsep_conv2d_ref(x_nchw, params, *, kernel_size=7, padding=3):
    """Pure-JAX reference mirroring the PyTorch forward pass."""
    N, C, H, W = x_nchw.shape
    Cout = params["w_pw"].shape[0]
    x = x_nchw.astype(jnp.float32)
    dn = ("NCHW", "OIHW", "NCHW")
    y = lax.conv_general_dilated(
        x, params["w_dw"].astype(jnp.float32), window_strides=(1, 1),
        padding=[(padding, padding), (padding, padding)],
        dimension_numbers=dn, feature_group_count=C,
        precision=lax.Precision.HIGHEST)
    y = y + params["b_dw"].reshape(1, C, 1, 1)
    z = lax.conv_general_dilated(
        y, params["w_pw"].astype(jnp.float32), window_strides=(1, 1),
        padding="VALID", dimension_numbers=dn,
        precision=lax.Precision.HIGHEST)
    return z + params["b_pw"].reshape(1, Cout, 1, 1)


if __name__ == "__main__":
    # Small shapes consistent with the module / ConvNeXt usage:
    # N=2, in_channels=8, out_channels=16, H=W=16, depthwise 7x7, pad=3.
    N, C, Cout, H, W = 2, 8, 16, 16, 16
    K, PAD = 7, 3

    key = jax.random.PRNGKey(0)
    ks = jax.random.split(key, 5)
    params = {
        "w_dw": 0.1 * jax.random.normal(ks[0], (C, 1, K, K), jnp.float32),
        "b_dw": 0.1 * jax.random.normal(ks[1], (C,), jnp.float32),
        "w_pw": 0.1 * jax.random.normal(ks[2], (Cout, C, 1, 1), jnp.float32),
        "b_pw": 0.1 * jax.random.normal(ks[3], (Cout,), jnp.float32),
    }
    x = jax.random.normal(ks[4], (N, C, H, W), jnp.float32)

    y = dwsep_conv2d(x, params, kernel_size=K, padding=PAD)
    y = jax.block_until_ready(y)

    y_ref = dwsep_conv2d_ref(x, params, kernel_size=K, padding=PAD)
    assert y.shape == (N, Cout, H, W), y.shape
    assert jnp.allclose(y, y_ref, atol=1e-3, rtol=1e-3), (
        f"max abs diff {jnp.max(jnp.abs(y - y_ref))}")

    print("KERNEL_OK")
</pallas_src>

<mosaic_0001>
module attributes {stable_mosaic.version = 11 : i64} {
  func.func @dwsep_kernel(%arg0: i32, %arg1: memref<1x8x512xf32, #tpu.memory_space<vmem>>, %arg2: memref<8x49xf32, #tpu.memory_space<vmem>>, %arg3: memref<8x1xf32, #tpu.memory_space<vmem>>, %arg4: memref<16x8xf32, #tpu.memory_space<vmem>>, %arg5: memref<16x1xf32, #tpu.memory_space<vmem>>, %arg6: memref<1x16x512xf32, #tpu.memory_space<vmem>>) attributes {dimension_semantics = [#tpu.dimension_semantics<parallel>], iteration_bounds = array<i64: 2>, scalar_prefetch = 0 : i64, scratch_operands = 0 : i64, tpu.core_type = #tpu.core_type<tc>, window_params = [{transform_indices = @transform_0, window_bounds = array<i64: 1, 8, 512>}, {pipeline_mode = #tpu.pipeline_mode<synchronous>, transform_indices = @transform_1, window_bounds = array<i64: 8, 49>}, {pipeline_mode = #tpu.pipeline_mode<synchronous>, transform_indices = @transform_2, window_bounds = array<i64: 8, 1>}, {pipeline_mode = #tpu.pipeline_mode<synchronous>, transform_indices = @transform_3, window_bounds = array<i64: 16, 8>}, {pipeline_mode = #tpu.pipeline_mode<synchronous>, transform_indices = @transform_4, window_bounds = array<i64: 16, 1>}, {transform_indices = @transform_5, window_bounds = array<i64: 1, 16, 512>}]} {
    %c0 = arith.constant 0 : index
    %c0_0 = arith.constant 0 : index
    %c0_1 = arith.constant 0 : index
    %0 = vector.load %arg1[%c0, %c0_0, %c0_1] : memref<1x8x512xf32, #tpu.memory_space<vmem>>, vector<1x8x512xf32>
    %1 = vector.shape_cast %0 : vector<1x8x512xf32> to vector<8x512xf32>
    %c0_2 = arith.constant 0 : index
    %c0_3 = arith.constant 0 : index
    %2 = vector.load %arg2[%c0_2, %c0_3] : memref<8x49xf32, #tpu.memory_space<vmem>>, vector<8x49xf32>
    %3 = vector.extract_strided_slice %2 {offsets = [0, 0], sizes = [8, 1], strides = [1, 1]} : vector<8x49xf32> to vector<8x1xf32>
    %4 = vector.broadcast %3 : vector<8x1xf32> to vector<8x512xf32>
    %5 = arith.mulf %1, %4 : vector<8x512xf32>
    %c511_i32 = arith.constant 511 : i32
    %6 = tpu.dynamic_rotate %1 by %c511_i32 dim 1 : vector<8x512xf32>, i32 -> vector<8x512xf32>
    %7 = vector.extract_strided_slice %2 {offsets = [0, 1], sizes = [8, 1], strides = [1, 1]} : vector<8x49xf32> to vector<8x1xf32>
    %8 = vector.broadcast %7 : vector<8x1xf32> to vector<8x512xf32>
    %9 = arith.mulf %6, %8 : vector<8x512xf32>
    %10 = arith.addf %5, %9 : vector<8x512xf32>
    %c510_i32 = arith.constant 510 : i32
    %11 = tpu.dynamic_rotate %1 by %c510_i32 dim 1 : vector<8x512xf32>, i32 -> vector<8x512xf32>
    %12 = vector.extract_strided_slice %2 {offsets = [0, 2], sizes = [8, 1], strides = [1, 1]} : vector<8x49xf32> to vector<8x1xf32>
    %13 = vector.broadcast %12 : vector<8x1xf32> to vector<8x512xf32>
    %14 = arith.mulf %11, %13 : vector<8x512xf32>
    %15 = arith.addf %10, %14 : vector<8x512xf32>
    %c509_i32 = arith.constant 509 : i32
    %16 = tpu.dynamic_rotate %1 by %c509_i32 dim 1 : vector<8x512xf32>, i32 -> vector<8x512xf32>
    %17 = vector.extract_strided_slice %2 {offsets = [0, 3], sizes = [8, 1], strides = [1, 1]} : vector<8x49xf32> to vector<8x1xf32>
    %18 = vector.broadcast %17 : vector<8x1xf32> to vector<8x512xf32>
    %19 = arith.mulf %16, %18 : vector<8x512xf32>
    %20 = arith.addf %15, %19 : vector<8x512xf32>
    %c508_i32 = arith.constant 508 : i32
    %21 = tpu.dynamic_rotate %1 by %c508_i32 dim 1 : vector<8x512xf32>, i32 -> vector<8x512xf32>
    %22 = vector.extract_strided_slice %2 {offsets = [0, 4], sizes = [8, 1], strides = [1, 1]} : vector<8x49xf32> to vector<8x1xf32>
    %23 = vector.broadcast %22 : vector<8x1xf32> to vector<8x512xf32>
    %24 = arith.mulf %21, %23 : vector<8x512xf32>
    %25 = arith.addf %20, %24 : vector<8x512xf32>
    %c507_i32 = arith.constant 507 : i32
    %26 = tpu.dynamic_rotate %1 by %c507_i32 dim 1 : vector<8x512xf32>, i32 -> vector<8x512xf32>
    %27 = vector.extract_strided_slice %2 {offsets = [0, 5], sizes = [8, 1], strides = [1, 1]} : vector<8x49xf32> to vector<8x1xf32>
    %28 = vector.broadcast %27 : vector<8x1xf32> to vector<8x512xf32>
    %29 = arith.mulf %26, %28 : vector<8x512xf32>
    %30 = arith.addf %25, %29 : vector<8x512xf32>
    %c506_i32 = arith.constant 506 : i32
    %31 = tpu.dynamic_rotate %1 by %c506_i32 dim 1 : vector<8x512xf32>, i32 -> vector<8x512xf32>
    %32 = vector.extract_strided_slice %2 {offsets = [0, 6], sizes = [8, 1], strides = [1, 1]} : vector<8x49xf32> to vector<8x1xf32>
    %33 = vector.broadcast %32 : vector<8x1xf32> to vector<8x512xf32>
    %34 = arith.mulf %31, %33 : vector<8x512xf32>
    %35 = arith.addf %30, %34 : vector<8x512xf32>
    %c490_i32 = arith.constant 490 : i32
    %36 = tpu.dynamic_rotate %1 by %c490_i32 dim 1 : vector<8x512xf32>, i32 -> vector<8x512xf32>
    %37 = vector.extract_strided_slice %2 {offsets = [0, 7], sizes = [8, 1], strides = [1, 1]} : vector<8x49xf32> to vector<8x1xf32>
    %38 = vector.broadcast %37 : vector<8x1xf32> to vector<8x512xf32>
    %39 = arith.mulf %36, %38 : vector<8x512xf32>
    %40 = arith.addf %35, %39 : vector<8x512xf32>
    %c489_i32 = arith.constant 489 : i32
    %41 = tpu.dynamic_rotate %1 by %c489_i32 dim 1 : vector<8x512xf32>, i32 -> vector<8x512xf32>
    %42 = vector.extract_strided_slice %2 {offsets = [0, 8], sizes = [8, 1], strides = [1, 1]} : vector<8x49xf32> to vector<8x1xf32>
    %43 = vector.broadcast %42 : vector<8x1xf32> to vector<8x512xf32>
    %44 = arith.mulf %41, %43 : vector<8x512xf32>
    %45 = arith.addf %40, %44 : vector<8x512xf32>
    %c488_i32 = arith.constant 488 : i32
    %46 = tpu.dynamic_rotate %1 by %c488_i32 dim 1 : vector<8x512xf32>, i32 -> vector<8x512xf32>
    %47 = vector.extract_strided_slice %2 {offsets = [0, 9], sizes = [8, 1], strides = [1, 1]} : vector<8x49xf32> to vector<8x1xf32>
    %48 = vector.broadcast %47 : vector<8x1xf32> to vector<8x512xf32>
    %49 = arith.mulf %46, %48 : vector<8x512xf32>
    %50 = arith.addf %45, %49 : vector<8x512xf32>
    %c487_i32 = arith.constant 487 : i32
    %51 = tpu.dynamic_rotate %1 by %c487_i32 dim 1 : vector<8x512xf32>, i32 -> vector<8x512xf32>
    %52 = vector.extract_strided_slice %2 {offsets = [0, 10], sizes = [8, 1], strides = [1, 1]} : vector<8x49xf32> to vector<8x1xf32>
    %53 = vector.broadcast %52 : vector<8x1xf32> to vector<8x512xf32>
    %54 = arith.mulf %51, %53 : vector<8x512xf32>
    %55 = arith.addf %50, %54 : vector<8x512xf32>
    %c486_i32 = arith.constant 486 : i32
    %56 = tpu.dynamic_rotate %1 by %c486_i32 dim 1 : vector<8x512xf32>, i32 -> vector<8x512xf32>
    %57 = vector.extract_strided_slice %2 {offsets = [0, 11], sizes = [8, 1], strides = [1, 1]} : vector<8x49xf32> to vector<8x1xf32>
    %58 = vector.broadcast %57 : vector<8x1xf32> to vector<8x512xf32>
    %59 = arith.mulf %56, %58 : vector<8x512xf32>
    %60 = arith.addf %55, %59 : vector<8x512xf32>
    %c485_i32 = arith.constant 485 : i32
    %61 = tpu.dynamic_rotate %1 by %c485_i32 dim 1 : vector<8x512xf32>, i32 -> vector<8x512xf32>
    %62 = vector.extract_strided_slice %2 {offsets = [0, 12], sizes = [8, 1], strides = [1, 1]} : vector<8x49xf32> to vector<8x1xf32>
    %63 = vector.broadcast %62 : vector<8x1xf32> to vector<8x512xf32>
    %64 = arith.mulf %61, %63 : vector<8x512xf32>
    %65 = arith.addf %60, %64 : vector<8x512xf32>
    %c484_i32 = arith.constant 484 : i32
    %66 = tpu.dynamic_rotate %1 by %c484_i32 dim 1 : vector<8x512xf32>, i32 -> vector<8x512xf32>
    %67 = vector.extract_strided_slice %2 {offsets = [0, 13], sizes = [8, 1], strides = [1, 1]} : vector<8x49xf32> to vector<8x1xf32>
    %68 = vector.broadcast %67 : vector<8x1xf32> to vector<8x512xf32>
    %69 = arith.mulf %66, %68 : vector<8x512xf32>
    %70 = arith.addf %65, %69 : vector<8x512xf32>
    %c468_i32 = arith.constant 468 : i32
    %71 = tpu.dynamic_rotate %1 by %c468_i32 dim 1 : vector<8x512xf32>, i32 -> vector<8x512xf32>
    %72 = vector.extract_strided_slice %2 {offsets = [0, 14], sizes = [8, 1], strides = [1, 1]} : vector<8x49xf32> to vector<8x1xf32>
    %73 = vector.broadcast %72 : vector<8x1xf32> to vector<8x512xf32>
    %74 = arith.mulf %71, %73 : vector<8x512xf32>
    %75 = arith.addf %70, %74 : vector<8x512xf32>
    %c467_i32 = arith.constant 467 : i32
    %76 = tpu.dynamic_rotate %1 by %c467_i32 dim 1 : vector<8x512xf32>, i32 -> vector<8x512xf32>
    %77 = vector.extract_strided_slice %2 {offsets = [0, 15], sizes = [8, 1], strides = [1, 1]} : vector<8x49xf32> to vector<8x1xf32>
    %78 = vector.broadcast %77 : vector<8x1xf32> to vector<8x512xf32>
    %79 = arith.mulf %76, %78 : vector<8x512xf32>
    %80 = arith.addf %75, %79 : vector<8x512xf32>
    %c466_i32 = arith.constant 466 : i32
    %81 = tpu.dynamic_rotate %1 by %c466_i32 dim 1 : vector<8x512xf32>, i32 -> vector<8x512xf32>
    %82 = vector.extract_strided_slice %2 {offsets = [0, 16], sizes = [8, 1], strides = [1, 1]} : vector<8x49xf32> to vector<8x1xf32>
    %83 = vector.broadcast %82 : vector<8x1xf32> to vector<8x512xf32>
    %84 = arith.mulf %81, %83 : vector<8x512xf32>
    %85 = arith.addf %80, %84 : vector<8x512xf32>
    %c465_i32 = arith.constant 465 : i32
    %86 = tpu.dynamic_rotate %1 by %c465_i32 dim 1 : vector<8x512xf32>, i32 -> vector<8x512xf32>
    %87 = vector.extract_strided_slice %2 {offsets = [0, 17], sizes = [8, 1], strides = [1, 1]} : vector<8x49xf32> to vector<8x1xf32>
    %88 = vector.broadcast %87 : vector<8x1xf32> to vector<8x512xf32>
    %89 = arith.mulf %86, %88 : vector<8x512xf32>
    %90 = arith.addf %85, %89 : vector<8x512xf32>
    %c464_i32 = arith.constant 464 : i32
    %91 = tpu.dynamic_rotate %1 by %c464_i32 dim 1 : vector<8x512xf32>, i32 -> vector<8x512xf32>
    %92 = vector.extract_strided_slice %2 {offsets = [0, 18], sizes = [8, 1], strides = [1, 1]} : vector<8x49xf32> to vector<8x1xf32>
    %93 = vector.broadcast %92 : vector<8x1xf32> to vector<8x512xf32>
    %94 = arith.mulf %91, %93 : vector<8x512xf32>
    %95 = arith.addf %90, %94 : vector<8x512xf32>
    %c463_i32 = arith.constant 463 : i32
    %96 = tpu.dynamic_rotate %1 by %c463_i32 dim 1 : vector<8x512xf32>, i32 -> vector<8x512xf32>
    %97 = vector.extract_strided_slice %2 {offsets = [0, 19], sizes = [8, 1], strides = [1, 1]} : vector<8x49xf32> to vector<8x1xf32>
    %98 = vector.broadcast %97 : vector<8x1xf32> to vector<8x512xf32>
    %99 = arith.mulf %96, %98 : vector<8x512xf32>
    %100 = arith.addf %95, %99 : vector<8x512xf32>
    %c462_i32 = arith.constant 462 : i32
    %101 = tpu.dynamic_rotate %1 by %c462_i32 dim 1 : vector<8x512xf32>, i32 -> vector<8x512xf32>
    %102 = vector.extract_strided_slice %2 {offsets = [0, 20], sizes = [8, 1], strides = [1, 1]} : vector<8x49xf32> to vector<8x1xf32>
    %103 = vector.broadcast %102 : vector<8x1xf32> to vector<8x512xf32>
    %104 = arith.mulf %101, %103 : vector<8x512xf32>
    %105 = arith.addf %100, %104 : vector<8x512xf32>
    %c446_i32 = arith.constant 446 : i32
    %106 = tpu.dynamic_rotate %1 by %c446_i32 dim 1 : vector<8x512xf32>, i32 -> vector<8x512xf32>
    %107 = vector.extract_strided_slice %2 {offsets = [0, 21], sizes = [8, 1], strides = [1, 1]} : vector<8x49xf32> to vector<8x1xf32>
    %108 = vector.broadcast %107 : vector<8x1xf32> to vector<8x512xf32>
    %109 = arith.mulf %106, %108 : vector<8x512xf32>
    %110 = arith.addf %105, %109 : vector<8x512xf32>
    %c445_i32 = arith.constant 445 : i32
    %111 = tpu.dynamic_rotate %1 by %c445_i32 dim 1 : vector<8x512xf32>, i32 -> vector<8x512xf32>
    %112 = vector.extract_strided_slice %2 {offsets = [0, 22], sizes = [8, 1], strides = [1, 1]} : vector<8x49xf32> to vector<8x1xf32>
    %113 = vector.broadcast %112 : vector<8x1xf32> to vector<8x512xf32>
    %114 = arith.mulf %111, %113 : vector<8x512xf32>
    %115 = arith.addf %110, %114 : vector<8x512xf32>
    %c444_i32 = arith.constant 444 : i32
    %116 = tpu.dynamic_rotate %1 by %c444_i32 dim 1 : vector<8x512xf32>, i32 -> vector<8x512xf32>
    %117 = vector.extract_strided_slice %2 {offsets = [0, 23], sizes = [8, 1], strides = [1, 1]} : vector<8x49xf32> to vector<8x1xf32>
    %118 = vector.broadcast %117 : vector<8x1xf32> to vector<8x512xf32>
    %119 = arith.mulf %116, %118 : vector<8x512xf32>
    %120 = arith.addf %115, %119 : vector<8x512xf32>
    %c443_i32 = arith.constant 443 : i32
    %121 = tpu.dynamic_rotate %1 by %c443_i32 dim 1 : vector<8x512xf32>, i32 -> vector<8x512xf32>
    %122 = vector.extract_strided_slice %2 {offsets = [0, 24], sizes = [8, 1], strides = [1, 1]} : vector<8x49xf32> to vector<8x1xf32>
    %123 = vector.broadcast %122 : vector<8x1xf32> to vector<8x512xf32>
    %124 = arith.mulf %121, %123 : vector<8x512xf32>
    %125 = arith.addf %120, %124 : vector<8x512xf32>
    %c442_i32 = arith.constant 442 : i32
    %126 = tpu.dynamic_rotate %1 by %c442_i32 dim 1 : vector<8x512xf32>, i32 -> vector<8x512xf32>
    %127 = vector.extract_strided_slice %2 {offsets = [0, 25], sizes = [8, 1], strides = [1, 1]} : vector<8x49xf32> to vector<8x1xf32>
    %128 = vector.broadcast %127 : vector<8x1xf32> to vector<8x512xf32>
    %129 = arith.mulf %126, %128 : vector<8x512xf32>
    %130 = arith.addf %125, %129 : vector<8x512xf32>
    %c441_i32 = arith.constant 441 : i32
    %131 = tpu.dynamic_rotate %1 by %c441_i32 dim 1 : vector<8x512xf32>, i32 -> vector<8x512xf32>
    %132 = vector.extract_strided_slice %2 {offsets = [0, 26], sizes = [8, 1], strides = [1, 1]} : vector<8x49xf32> to vector<8x1xf32>
    %133 = vector.broadcast %132 : vector<8x1xf32> to vector<8x512xf32>
    %134 = arith.mulf %131, %133 : vector<8x512xf32>
    %135 = arith.addf %130, %134 : vector<8x512xf32>
    %c440_i32 = arith.constant 440 : i32
    %136 = tpu.dynamic_rotate %1 by %c440_i32 dim 1 : vector<8x512xf32>, i32 -> vector<8x512xf32>
    %137 = vector.extract_strided_slice %2 {offsets = [0, 27], sizes = [8, 1], strides = [1, 1]} : vector<8x49xf32> to vector<8x1xf32>
    %138 = vector.broadcast %137 : vector<8x1xf32> to vector<8x512xf32>
    %139 = arith.mulf %136, %138 : vector<8x512xf32>
    %140 = arith.addf %135, %139 : vector<8x512xf32>
    %c424_i32 = arith.constant 424 : i32
    %141 = tpu.dynamic_rotate %1 by %c424_i32 dim 1 : vector<8x512xf32>, i32 -> vector<8x512xf32>
    %142 = vector.extract_strided_slice %2 {offsets = [0, 28], sizes = [8, 1], strides = [1, 1]} : vector<8x49xf32> to vector<8x1xf32>
    %143 = vector.broadcast %142 : vector<8x1xf32> to vector<8x512xf32>
    %144 = arith.mulf %141, %143 : vector<8x512xf32>
    %145 = arith.addf %140, %144 : vector<8x512xf32>
    %c423_i32 = arith.constant 423 : i32
    %146 = tpu.dynamic_rotate %1 by %c423_i32 dim 1 : vector<8x512xf32>, i32 -> vector<8x512xf32>
    %147 = vector.extract_strided_slice %2 {offsets = [0, 29], sizes = [8, 1], strides = [1, 1]} : vector<8x49xf32> to vector<8x1xf32>
    %148 = vector.broadcast %147 : vector<8x1xf32> to vector<8x512xf32>
    %149 = arith.mulf %146, %148 : vector<8x512xf32>
    %150 = arith.addf %145, %149 : vector<8x512xf32>
    %c422_i32 = arith.constant 422 : i32
    %151 = tpu.dynamic_rotate %1 by %c422_i32 dim 1 : vector<8x512xf32>, i32 -> vector<8x512xf32>
    %152 = vector.extract_strided_slice %2 {offsets = [0, 30], sizes = [8, 1], strides = [1, 1]} : vector<8x49xf32> to vector<8x1xf32>
    %153 = vector.broadcast %152 : vector<8x1xf32> to vector<8x512xf32>
    %154 = arith.mulf %151, %153 : vector<8x512xf32>
    %155 = arith.addf %150, %154 : vector<8x512xf32>
    %c421_i32 = arith.constant 421 : i32
    %156 = tpu.dynamic_rotate %1 by %c421_i32 dim 1 : vector<8x512xf32>, i32 -> vector<8x512xf32>
    %157 = vector.extract_strided_slice %2 {offsets = [0, 31], sizes = [8, 1], strides = [1, 1]} : vector<8x49xf32> to vector<8x1xf32>
    %158 = vector.broadcast %157 : vector<8x1xf32> to vector<8x512xf32>
    %159 = arith.mulf %156, %158 : vector<8x512xf32>
    %160 = arith.addf %155, %159 : vector<8x512xf32>
    %c420_i32 = arith.constant 420 : i32
    %161 = tpu.dynamic_rotate %1 by %c420_i32 dim 1 : vector<8x512xf32>, i32 -> vector<8x512xf32>
    %162 = vector.extract_strided_slice %2 {offsets = [0, 32], sizes = [8, 1], strides = [1, 1]} : vector<8x49xf32> to vector<8x1xf32>
    %163 = vector.broadcast %162 : vector<8x1xf32> to vector<8x512xf32>
    %164 = arith.mulf %161, %163 : vector<8x512xf32>
    %165 = arith.addf %160, %164 : vector<8x512xf32>
    %c419_i32 = arith.constant 419 : i32
    %166 = tpu.dynamic_rotate %1 by %c419_i32 dim 1 : vector<8x512xf32>, i32 -> vector<8x512xf32>
    %167 = vector.extract_strided_slice %2 {offsets = [0, 33], sizes = [8, 1], strides = [1, 1]} : vector<8x49xf32> to vector<8x1xf32>
    %168 = vector.broadcast %167 : vector<8x1xf32> to vector<8x512xf32>
    %169 = arith.mulf %166, %168 : vector<8x512xf32>
    %170 = arith.addf %165, %169 : vector<8x512xf32>
    %c418_i32 = arith.constant 418 : i32
    %171 = tpu.dynamic_rotate %1 by %c418_i32 dim 1 : vector<8x512xf32>, i32 -> vector<8x512xf32>
    %172 = vector.extract_strided_slice %2 {offsets = [0, 34], sizes = [8, 1], strides = [1, 1]} : vector<8x49xf32> to vector<8x1xf32>
    %173 = vector.broadcast %172 : vector<8x1xf32> to vector<8x512xf32>
    %174 = arith.mulf %171, %173 : vector<8x512xf32>
    %175 = arith.addf %170, %174 : vector<8x512xf32>
    %c402_i32 = arith.constant 402 : i32
    %176 = tpu.dynamic_rotate %1 by %c402_i32 dim 1 : vector<8x512xf32>, i32 -> vector<8x512xf32>
    %177 = vector.extract_strided_slice %2 {offsets = [0, 35], sizes = [8, 1], strides = [1, 1]} : vector<8x49xf32> to vector<8x1xf32>
    %178 = vector.broadcast %177 : vector<8x1xf32> to vector<8x512xf32>
    %179 = arith.mulf %176, %178 : vector<8x512xf32>
    %180 = arith.addf %175, %179 : vector<8x512xf32>
    %c401_i32 = arith.constant 401 : i32
    %181 = tpu.dynamic_rotate %1 by %c401_i32 dim 1 : vector<8x512xf32>, i32 -> vector<8x512xf32>
    %182 = vector.extract_strided_slice %2 {offsets = [0, 36], sizes = [8, 1], strides = [1, 1]} : vector<8x49xf32> to vector<8x1xf32>
    %183 = vector.broadcast %182 : vector<8x1xf32> to vector<8x512xf32>
    %184 = arith.mulf %181, %183 : vector<8x512xf32>
    %185 = arith.addf %180, %184 : vector<8x512xf32>
    %c400_i32 = arith.constant 400 : i32
    %186 = tpu.dynamic_rotate %1 by %c400_i32 dim 1 : vector<8x512xf32>, i32 -> vector<8x512xf32>
    %187 = vector.extract_strided_slice %2 {offsets = [0, 37], sizes = [8, 1], strides = [1, 1]} : vector<8x49xf32> to vector<8x1xf32>
    %188 = vector.broadcast %187 : vector<8x1xf32> to vector<8x512xf32>
    %189 = arith.mulf %186, %188 : vector<8x512xf32>
    %190 = arith.addf %185, %189 : vector<8x512xf32>
    %c399_i32 = arith.constant 399 : i32
    %191 = tpu.dynamic_rotate %1 by %c399_i32 dim 1 : vector<8x512xf32>, i32 -> vector<8x512xf32>
    %192 = vector.extract_strided_slice %2 {offsets = [0, 38], sizes = [8, 1], strides = [1, 1]} : vector<8x49xf32> to vector<8x1xf32>
    %193 = vector.broadcast %192 : vector<8x1xf32> to vector<8x512xf32>
    %194 = arith.mulf %191, %193 : vector<8x512xf32>
    %195 = arith.addf %190, %194 : vector<8x512xf32>
    %c398_i32 = arith.constant 398 : i32
    %196 = tpu.dynamic_rotate %1 by %c398_i32 dim 1 : vector<8x512xf32>, i32 -> vector<8x512xf32>
    %197 = vector.extract_strided_slice %2 {offsets = [0, 39], sizes = [8, 1], strides = [1, 1]} : vector<8x49xf32> to vector<8x1xf32>
    %198 = vector.broadcast %197 : vector<8x1xf32> to vector<8x512xf32>
    %199 = arith.mulf %196, %198 : vector<8x512xf32>
    %200 = arith.addf %195, %199 : vector<8x512xf32>
    %c397_i32 = arith.constant 397 : i32
    %201 = tpu.dynamic_rotate %1 by %c397_i32 dim 1 : vector<8x512xf32>, i32 -> vector<8x512xf32>
    %202 = vector.extract_strided_slice %2 {offsets = [0, 40], sizes = [8, 1], strides = [1, 1]} : vector<8x49xf32> to vector<8x1xf32>
    %203 = vector.broadcast %202 : vector<8x1xf32> to vector<8x512xf32>
    %204 = arith.mulf %201, %203 : vector<8x512xf32>
    %205 = arith.addf %200, %204 : vector<8x512xf32>
    %c396_i32 = arith.constant 396 : i32
    %206 = tpu.dynamic_rotate %1 by %c396_i32 dim 1 : vector<8x512xf32>, i32 -> vector<8x512xf32>
    %207 = vector.extract_strided_slice %2 {offsets = [0, 41], sizes = [8, 1], strides = [1, 1]} : vector<8x49xf32> to vector<8x1xf32>
    %208 = vector.broadcast %207 : vector<8x1xf32> to vector<8x512xf32>
    %209 = arith.mulf %206, %208 : vector<8x512xf32>
    %210 = arith.addf %205, %209 : vector<8x512xf32>
    %c380_i32 = arith.constant 380 : i32
    %211 = tpu.dynamic_rotate %1 by %c380_i32 dim 1 : vector<8x512xf32>, i32 -> vector<8x512xf32>
    %212 = vector.extract_strided_slice %2 {offsets = [0, 42], sizes = [8, 1], strides = [1, 1]} : vector<8x49xf32> to vector<8x1xf32>
    %213 = vector.broadcast %212 : vector<8x1xf32> to vector<8x512xf32>
    %214 = arith.mulf %211, %213 : vector<8x512xf32>
    %215 = arith.addf %210, %214 : vector<8x512xf32>
    %c379_i32 = arith.constant 379 : i32
    %216 = tpu.dynamic_rotate %1 by %c379_i32 dim 1 : vector<8x512xf32>, i32 -> vector<8x512xf32>
    %217 = vector.extract_strided_slice %2 {offsets = [0, 43], sizes = [8, 1], strides = [1, 1]} : vector<8x49xf32> to vector<8x1xf32>
    %218 = vector.broadcast %217 : vector<8x1xf32> to vector<8x512xf32>
    %219 = arith.mulf %216, %218 : vector<8x512xf32>
    %220 = arith.addf %215, %219 : vector<8x512xf32>
    %c378_i32 = arith.constant 378 : i32
    %221 = tpu.dynamic_rotate %1 by %c378_i32 dim 1 : vector<8x512xf32>, i32 -> vector<8x512xf32>
    %222 = vector.extract_strided_slice %2 {offsets = [0, 44], sizes = [8, 1], strides = [1, 1]} : vector<8x49xf32> to vector<8x1xf32>
    %223 = vector.broadcast %222 : vector<8x1xf32> to vector<8x512xf32>
    %224 = arith.mulf %221, %223 : vector<8x512xf32>
    %225 = arith.addf %220, %224 : vector<8x512xf32>
    %c377_i32 = arith.constant 377 : i32
    %226 = tpu.dynamic_rotate %1 by %c377_i32 dim 1 : vector<8x512xf32>, i32 -> vector<8x512xf32>
    %227 = vector.extract_strided_slice %2 {offsets = [0, 45], sizes = [8, 1], strides = [1, 1]} : vector<8x49xf32> to vector<8x1xf32>
    %228 = vector.broadcast %227 : vector<8x1xf32> to vector<8x512xf32>
    %229 = arith.mulf %226, %228 : vector<8x512xf32>
    %230 = arith.addf %225, %229 : vector<8x512xf32>
    %c376_i32 = arith.constant 376 : i32
    %231 = tpu.dynamic_rotate %1 by %c376_i32 dim 1 : vector<8x512xf32>, i32 -> vector<8x512xf32>
    %232 = vector.extract_strided_slice %2 {offsets = [0, 46], sizes = [8, 1], strides = [1, 1]} : vector<8x49xf32> to vector<8x1xf32>
    %233 = vector.broadcast %232 : vector<8x1xf32> to vector<8x512xf32>
    %234 = arith.mulf %231, %233 : vector<8x512xf32>
    %235 = arith.addf %230, %234 : vector<8x512xf32>
    %c375_i32 = arith.constant 375 : i32
    %236 = tpu.dynamic_rotate %1 by %c375_i32 dim 1 : vector<8x512xf32>, i32 -> vector<8x512xf32>
    %237 = vector.extract_strided_slice %2 {offsets = [0, 47], sizes = [8, 1], strides = [1, 1]} : vector<8x49xf32> to vector<8x1xf32>
    %238 = vector.broadcast %237 : vector<8x1xf32> to vector<8x512xf32>
    %239 = arith.mulf %236, %238 : vector<8x512xf32>
    %240 = arith.addf %235, %239 : vector<8x512xf32>
    %c374_i32 = arith.constant 374 : i32
    %241 = tpu.dynamic_rotate %1 by %c374_i32 dim 1 : vector<8x512xf32>, i32 -> vector<8x512xf32>
    %242 = vector.extract_strided_slice %2 {offsets = [0, 48], sizes = [8, 1], strides = [1, 1]} : vector<8x49xf32> to vector<8x1xf32>
    %243 = vector.broadcast %242 : vector<8x1xf32> to vector<8x512xf32>
    %244 = arith.mulf %241, %243 : vector<8x512xf32>
    %245 = arith.addf %240, %244 : vector<8x512xf32>
    %c0_4 = arith.constant 0 : index
    %c0_5 = arith.constant 0 : index
    %246 = vector.load %arg3[%c0_4, %c0_5] : memref<8x1xf32, #tpu.memory_space<vmem>>, vector<8x1xf32>
    %247 = vector.broadcast %246 : vector<8x1xf32> to vector<8x512xf32>
    %248 = arith.addf %245, %247 : vector<8x512xf32>
    %c0_6 = arith.constant 0 : index
    %c0_7 = arith.constant 0 : index
    %249 = vector.load %arg4[%c0_6, %c0_7] : memref<16x8xf32, #tpu.memory_space<vmem>>, vector<16x8xf32>
    %cst = arith.constant dense<0.000000e+00> : vector<16x512xf32>
    %250 = tpu.matmul %249, %248, %cst {dimension_numbers = #tpu.dot_dimension_numbers<[1], [0], [0], [1], [0, 0, 1, 1], [], []>} : vector<16x8xf32>, vector<8x512xf32>, vector<16x512xf32> -> vector<16x512xf32>
    %c0_8 = arith.constant 0 : index
    %c0_9 = arith.constant 0 : index
    %251 = vector.load %arg5[%c0_8, %c0_9] : memref<16x1xf32, #tpu.memory_space<vmem>>, vector<16x1xf32>
    %252 = vector.broadcast %251 : vector<16x1xf32> to vector<16x512xf32>
    %253 = arith.addf %250, %252 : vector<16x512xf32>
    %c0_10 = arith.constant 0 : index
    %c0_11 = arith.constant 0 : index
    %c0_12 = arith.constant 0 : index
    %254 = vector.load %arg6[%c0_10, %c0_11, %c0_12] : memref<1x16x512xf32, #tpu.memory_space<vmem>>, vector<1x16x512xf32>
    %255 = vector.shape_cast %254 : vector<1x16x512xf32> to vector<16x512xf32>
    %256 = vector.shape_cast %253 : vector<16x512xf32> to vector<1x16x512xf32>
    tpu.vector_store %arg6[%c0_10, %c0_11, %c0_12], %256 {strides = array<i32>} : memref<1x16x512xf32, #tpu.memory_space<vmem>>, vector<1x16x512xf32>,
    return
  }
  func.func @transform_0(%arg0: i32) -> (i32, i32, i32) {
    %c0_i32 = arith.constant 0 : i32
    %c0_i32_0 = arith.constant 0 : i32
    %c0_i32_1 = arith.constant 0 : i32
    return %arg0, %c0_i32, %c0_i32_0 : i32, i32, i32
  }
  func.func @transform_1(%arg0: i32) -> (i32, i32) {
    %c0_i32 = arith.constant 0 : i32
    %c0_i32_0 = arith.constant 0 : i32
    %c0_i32_1 = arith.constant 0 : i32
    return %c0_i32, %c0_i32_0 : i32, i32
  }
  func.func @transform_2(%arg0: i32) -> (i32, i32) {
    %c0_i32 = arith.constant 0 : i32
    %c0_i32_0 = arith.constant 0 : i32
    %c0_i32_1 = arith.constant 0 : i32
    return %c0_i32, %c0_i32_0 : i32, i32
  }
  func.func @transform_3(%arg0: i32) -> (i32, i32) {
    %c0_i32 = arith.constant 0 : i32
    %c0_i32_0 = arith.constant 0 : i32
    %c0_i32_1 = arith.constant 0 : i32
    return %c0_i32, %c0_i32_0 : i32, i32
  }
  func.func @transform_4(%arg0: i32) -> (i32, i32) {
    %c0_i32 = arith.constant 0 : i32
    %c0_i32_0 = arith.constant 0 : i32
    %c0_i32_1 = arith.constant 0 : i32
    return %c0_i32, %c0_i32_0 : i32, i32
  }
  func.func @transform_5(%arg0: i32) -> (i32, i32, i32) {
    %c0_i32 = arith.constant 0 : i32
    %c0_i32_0 = arith.constant 0 : i32
    %c0_i32_1 = arith.constant 0 : i32
    return %arg0, %c0_i32, %c0_i32_0 : i32, i32, i32
  }
}

</mosaic_0001>

<bundles_post_ra>
// kernel: tpu_custom_call.1
= control target key start
LH: loop header
LB: loop body
LE: loop exit
PB: predicated region body
PF: predicated region fallthrough
CT: control target
= control target key end

     0   :  { %10 = vsyncpa [#allocation3], 0  ;;  %s3102_s0 = inlined_call_operand.hbm [shape: f32[2,8,512], index: 0, kind: input, shape index: {}]   ;;  %s3103_s1 = inlined_call_operand.vmem [shape: f32[8,49], index: 1, kind: input, shape index: {}]   ;;  %s3104_s2 = inlined_call_operand.vmem [shape: f32[8,1], index: 2, kind: input, shape index: {}]   ;;  %s3105_s3 = inlined_call_operand.vmem [shape: f32[16,8], index: 3, kind: input, shape index: {}]   ;;  %s3106_s4 = inlined_call_operand.vmem [shape: f32[16,1], index: 4, kind: input, shape index: {}]   ;;  %s3107_s5 = inlined_call_operand.hbm [shape: f32[2,16,512], index: 5, kind: output, shape index: {}]  }
   0x1   :  { %12 = vsyncpa [#allocation3 + $0x1], 0 }
   0x2   :  { %13 = vsyncpa [#allocation4], 0 }
   0x3   :  { %15 = vsyncpa [#allocation4 + $0x1], 0  ;;  %s2090_s18 = smov 0   ;;  %s2092_s19 = smov 0  }
   0x4   :  { %s2094_s20 = smov 0   ;;  %s2096_s21 = smov 0  }
   0x5 LB: > { %s2111_s22 = sadd.s32 4294967295, %s1962_s21   ;;  %s1640_s23 = sadd.s32 4294967294, %s1962_s21   ;;  %s1962_s21 = sphi %s2096_s21, %s3117_s21   ;;  %s1958_s20 = sphi %s2094_s20, %s3116_s20   ;;  %s1954_s19 = sphi %s2092_s19, %s3115_s19   ;;  %s1950_s18 = sphi %s2090_s18, %s3114_s18  }
   0x6   : > { %s2115_s24 = sadd.s32 1, %s1962_s21   ;;  %s28_s25 = sadd.s32 1, %s1958_s20 }
   0x7   : > { %s25_s26 = ssub.s32 %s1962_s21, %s2115_s24  ;;  %p35_p0 = scmp.ne.s32.totalorder %s1958_s20, %s1954_s19 }
   0x8   : > { %p26_p1 = scmp.eq.s32.totalorder %s25_s26, 0  ;;  %p36_p2 = scmp.eq.s32.totalorder %s1962_s21, 0 }
   0x9   : > { %p41_p3 = scmp.ne.s32.totalorder %s1954_s19, %s1950_s18  ;;  %p42_p4 = scmp.eq.s32.totalorder %s2111_s22, 0 }
   0xa   : > { %s2127_s27 = scalar_select %p26_p1, %s1958_s20, %s28_s25  }
   0xb   : > { %p2129_p5 = por %p36_p2, %p35_p0  ;;  %p2133_p6 = por %p42_p4, %p41_p3 }
   0xc   : > { %p149_p7 = scmp.eq.s32.totalorder %s2111_s22, 1  ;;  %p155_p8 = scmp.eq.s32.totalorder %s1640_s23, 1 }
   0xd   : > { %p1676_p10 = scmp.lt.s32.totalorder %s1962_s21, 2  ;;  %s187_s7 = sand.u32 1, %s1958_s20  }
   0xe   : > { %p2140_p11 = por %p149_p7, %p35_p0  ;;  %p2144_p12 = por %p155_p8, %p41_p3 }
   0xf   : > { %s1662_s8 = sshll.u32 %s1962_s21, 5  ;;  %s1643_s9 = sshll.u32 %s187_s7, 5 }
  0x10   : > { %s196_s12 = scalar_lea.hbm %s3102_s0, %s1662_s8  ;;  %s191_s14 = scalar_lea.vmem [#allocation2], %s1643_s9 }
  0x11   : > { %s198_s13 = sshll.u32 %s196_s12, 4  ;;  %s200_s15 = sshll.u32 %s191_s14, 4  ;;  %s199_s13 = int_to_ptr.hbm [resolvable:$true] %s198_s13  ;;  %s201_s15 = int_to_ptr.vmem [resolvable:$true] %s200_s15 }
  0x12   : > { %p2155_p13 = pnand %p1676_p10, %p2129_p5  ;;  %p1646_p0 = scmp.ge.s32.totalorder %s1962_s21, 1 }
  0x13   : > { %p205_p1 = scmp.lt.s32.totalorder %s1962_s21, 3  ;;  %s188_s17 = scalar_lea.sflag [#allocation3], %s187_s7 }
  0x14   : > { %s1866_s23 = sshra.s32 %s199_s13, 4  ;;  %p1870_p3 = pneg %p2155_p13  ;;  %s1867_s23 = int_to_ptr.hbm [resolvable:$true] %s1866_s23 }
  0x15   : > { %s1868_s25 = scalar_lea.hbm %s1867_s23, 32  ;;  %s1873_s28 = scalar_lea.hbm %s3102_s0, 64 }
  0x16   : > { %p1869_p2 = scmp.ne.s32.totalorder %s1867_s23, %s1868_s25  ;;  %p1874_p5 = scmp.lt.s32.totalorder %s1867_s23, %s3102_s0 }
  0x17   : > { %p1875_p8 = scmp.lt.s32.totalorder %s1873_s28, %s1868_s25 }
  0x18   : > { %p1871_p4 = pnand %p1870_p3, %p1869_p2 }
  0x19   : > { %p1876_p10 = por %p1875_p8, %p1874_p5 }
  0x1a   : > { %p1872_p7 = pneg %p1871_p4 }
  0x1c   : > { %p1877_p9 = pnand %p1876_p10, %p1872_p7 }
  0x1e   : > { %1880 = shalt.err (!%p1877_p9)
}
  0x1f   : > { %1671 = dma.hbm_to_vmem [thread:$0]  (!%p2155_p13), %s199_s13, 512, %s201_s15, %s188_s17  }
  0x20   : > { %p206_p2 = pnand %p1646_p0, %p205_p1 }
  0x21   : > { %s2176_s7 = sand.u32 (!%p206_p2), 1, %s1954_s19  }
  0x22   : > { %209 = sbr.rel (%p206_p2) target bundleno = 1015 (0x3f7), region = 40  ;;  %s1647_s11 = sshll.u32 (!%p206_p2), %s2176_s7, 5 }
  0x23   : > { %s212_s12 = scalar_lea.sflag (!%p206_p2), [#allocation3], %s2176_s7  ;;  %s2180_s14 = scalar_lea.vmem (!%p206_p2), [#allocation2], %s1647_s11 }
  0x27   : > { %1941 = dma.done.wait (%p2133_p6), %s212_s12, 512  }
  0x28   : > { %1943 = vsyncadd (%p2133_p6), %s212_s12, 4294966784  ;;  %v1964_v0 = vmov 0   ;;  %v1965_v1 = vmov 1   ;;  %v1966_v2 = vmov 2   ;;  %v2190_v3 = vld [vmem:[%s3103_s1] sm:$0xff]  ;;  %v2193_v4 = vld [vmem:[%s2180_s14 + $0x18] sm:$0xff]  ;;  %v265_v33 = vlaneseq }
  0x29   : > { %1806 = vset.pattern.permute.xlu0 %v1964_v0  ;;  %1807 = vset.pattern.permute.xlu2 %v1965_v1  ;;  %v2196_v5 = vld [vmem:[%s2180_s14 + $0x8] sm:$0xff]  ;;  %s1967_s29 = smov 127   ;;  %v2202_v6 = vld [vmem:[%s2180_s14] sm:$0xff]  ;;  %v2205_v7 = vld [vmem:[%s2180_s14 + $0x10] sm:$0xff]  ;;  %v1968_v8 = vmov 3   ;;  %s1969_s16 = smov 126  }
  0x2a   : > { %1808 = vset.pattern.permute.xlu1 %v1966_v2  ;;  %250 = vperm.xlu0 %1806, %v2190_v3   ;;  %s1970_s17 = smov 125   ;;  %s1971_s23 = smov 124   ;;  %v1972_v9 = vmov 4   ;;  %v1974_v10 = vmov 5   ;;  %v1975_v11 = vmov 6   ;;  %v1977_v12 = vmov 7  }
  0x2b   : > { %263 = vrot.lane.b32.xlu2 %v2193_v4, %s1967_s29  ;;  %259 = vrot.lane.b32.xlu1 %v2196_v5, %s1967_s29  ;;  %s1973_s25 = smov 123   ;;  %s1976_s26 = smov 122   ;;  %v1978_v13 = vmov 8   ;;  %v1980_v15 = vmov 9   ;;  %v1982_v17 = vmov 10   ;;  %v1984_v22 = vmov 11  }
  0x2c   : > { %s1979_s8 = smov 106   ;;  %s1981_s28 = smov 105   ;;  %v1986_v29 = vmov 12   ;;  %v2267_v34 = vand.u32 127, %v265_v33  ;;  %v1988_v45 = vmov 13  }
  0x2d   : > { %s1983_s9 = smov 104   ;;  %s1985_s10 = smov 103  }
  0x2e   : > { %vm267_vm0 = vcmp.lt.s32.totalorder %v2267_v34, 127  ;;  %vm317_vm1 = vcmp.lt.s32.totalorder %v2267_v34, 125  ;;  %s1987_s11 = smov 102   ;;  %vm292_vm2 = vcmp.lt.s32.totalorder %v2267_v34, 126  ;;  %vm342_vm3 = vcmp.lt.s32.totalorder %v2267_v34, 124  ;;  %s1989_s12 = smov 101  }
  0x2f   : > { %vm367_vm4 = vcmp.lt.s32.totalorder %v2267_v34, 123  ;;  %s1991_s13 = smov 100   ;;  %vm392_vm5 = vcmp.lt.s32.totalorder %v2267_v34, 122  ;;  %s1993_s15 = smov 84   ;;  %vm417_vm6 = vcmp.lt.s32.totalorder %v2267_v34, 106  ;;  %vm442_vm7 = vcmp.lt.s32.totalorder %v2267_v34, 105 }
  0x30   : > { %vm467_vm8 = vcmp.lt.s32.totalorder %v2267_v34, 104  ;;  %vm492_vm9 = vcmp.lt.s32.totalorder %v2267_v34, 103  ;;  %vm517_vm10 = vcmp.lt.s32.totalorder %v2267_v34, 102  ;;  %vm542_vm11 = vcmp.lt.s32.totalorder %v2267_v34, 101 }
  0x31   : > { %vm567_vm12 = vcmp.lt.s32.totalorder %v2267_v34, 100  ;;  %vm592_vm13 = vcmp.lt.s32.totalorder %v2267_v34, 84  ;;  %vm617_vm14 = vcmp.lt.s32.totalorder %v2267_v34, 83  ;;  %vm642_vm15 = vcmp.lt.s32.totalorder %v2267_v34, 82 }
  0x32   : > { %257 = vrot.lane.b32.xlu0 %v2202_v6, %s1967_s29 }
  0x33   : > { %273 = vperm.xlu2 %1807, %v2190_v3   ;;  %261 = vrot.lane.b32.xlu1 %v2205_v7, %s1967_s29  ;;  %s1995_s29 = smov 83  }
  0x34   : > { %1809 = vset.pattern.permute.xlu0 %v1968_v8 }
  0x3a   : > { %284 = vrot.lane.b32.xlu0 %v2202_v6, %s1969_s16 }
  0x3b   : > { %288 = vrot.lane.b32.xlu2 %v2205_v7, %s1969_s16  ;;  %286 = vrot.lane.b32.xlu1 %v2196_v5, %s1969_s16 }
  0x42   : > { %290 = vrot.lane.b32.xlu0 %v2193_v4, %s1969_s16  ;;  %s1997_s16 = smov 82  }
  0x43   : > { %309 = vrot.lane.b32.xlu2 %v2202_v6, %s1970_s17  ;;  %298 = vperm.xlu1 %1808, %v2190_v3  }
  0x4a   : > { %311 = vrot.lane.b32.xlu0 %v2196_v5, %s1970_s17 }
  0x4b   : > { %315 = vrot.lane.b32.xlu2 %v2193_v4, %s1970_s17  ;;  %313 = vrot.lane.b32.xlu1 %v2205_v7, %s1970_s17  ;;  %s1999_s17 = smov 81  }
  0x52   : > { %323 = vperm.xlu0 %1809, %v2190_v3  }
  0x53   : > { %336 = vrot.lane.b32.xlu2 %v2196_v5, %s1971_s23  ;;  %334 = vrot.lane.b32.xlu1 %v2202_v6, %s1971_s23 }
  0x5a   : > { %1810 = vset.pattern.permute.xlu0 %v1972_v9 }
  0x5b   : > { %340 = vrot.lane.b32.xlu2 %v2193_v4, %s1971_s23  ;;  %338 = vrot.lane.b32.xlu1 %v2205_v7, %s1971_s23  ;;  %s2001_s23 = smov 80  }
  0x5c   : > { %348 = vperm.xlu0 %1810, %v2190_v3  }
  0x63   : > { %361 = vrot.lane.b32.xlu2 %v2196_v5, %s1973_s25  ;;  %359 = vrot.lane.b32.xlu1 %v2202_v6, %s1973_s25 }
  0x64   : > { %1811 = vset.pattern.permute.xlu0 %v1974_v10 }
  0x65   : > { %373 = vperm.xlu0 %1811, %v2190_v3  }
  0x6b   : > { %365 = vrot.lane.b32.xlu2 %v2193_v4, %s1973_s25  ;;  %363 = vrot.lane.b32.xlu1 %v2205_v7, %s1973_s25  ;;  %s2003_s25 = smov 79  }
  0x6d   : > { %1812 = vset.pattern.permute.xlu0 %v1975_v11 }
  0x6e   : > { %398 = vperm.xlu0 %1812, %v2190_v3  }
  0x73   : > { %386 = vrot.lane.b32.xlu2 %v2196_v5, %s1976_s26  ;;  %384 = vrot.lane.b32.xlu1 %v2202_v6, %s1976_s26 }
  0x76   : > { %1813 = vset.pattern.permute.xlu0 %v1977_v12 }
  0x77   : > { %423 = vperm.xlu0 %1813, %v2190_v3  }
  0x7b   : > { %390 = vrot.lane.b32.xlu2 %v2193_v4, %s1976_s26  ;;  %388 = vrot.lane.b32.xlu1 %v2205_v7, %s1976_s26  ;;  %s2005_s26 = smov 78  }
  0x7f   : > { %1814 = vset.pattern.permute.xlu0 %v1978_v13 }
  0x80   : > { %448 = vperm.xlu0 %1814, %v2190_v3  }
  0x83   : > { %411 = vrot.lane.b32.xlu2 %v2196_v5, %s1979_s8  ;;  %409 = vrot.lane.b32.xlu1 %v2202_v6, %s1979_s8 }
  0x85   : > { %v264_v14 = vpop.permute.xlu2 %263 }
  0x88   : > { %1815 = vset.pattern.permute.xlu0 %v1980_v15 }
  0x89   : > { %473 = vperm.xlu0 %1815, %v2190_v3  }
  0x8b   : > { %415 = vrot.lane.b32.xlu2 %v2193_v4, %s1979_s8  ;;  %413 = vrot.lane.b32.xlu1 %v2205_v7, %s1979_s8  ;;  %s2007_s8 = smov 62  }
  0x8d   : > { %v2242_v16 = vpop.permute.xlu2 %273 }
  0x91   : > { %1816 = vset.pattern.permute.xlu0 %v1982_v17 }
  0x92   : > { %498 = vperm.xlu0 %1816, %v2190_v3  }
  0x93   : > { %436 = vrot.lane.b32.xlu2 %v2196_v5, %s1981_s28  ;;  %434 = vrot.lane.b32.xlu1 %v2202_v6, %s1981_s28 }
  0x95   : > { %v2246_v18 = vpop.permute.xlu2 %288 }
  0x9a   : > { %1817 = vset.pattern.permute.xlu0 %v1984_v22 }
  0x9b   : > { %440 = vrot.lane.b32.xlu2 %v2193_v4, %s1981_s28  ;;  %438 = vrot.lane.b32.xlu1 %v2205_v7, %s1981_s28  ;;  %s2009_s28 = smov 61  }
  0x9c   : > { %v251_v19 = vpop.permute.xlu0 %250  ;;  %523 = vperm.xlu0 %1817, %v2190_v3  }
  0x9d   : > { %v2251_v20 = vpop.permute.xlu2 %309  ;;  %v260_v21 = vpop.permute.xlu1 %259  ;;  %v254_v39 = vmul.f32 %v251_v19, %v2196_v5  ;;  %v256_v40 = vmul.f32 %v251_v19, %v2193_v4  ;;  %v253_v44 = vmul.f32 %v251_v19, %v2202_v6  ;;  %v255_v57 = vmul.f32 %v251_v19, %v2205_v7 }
  0xa3   : > { %461 = vrot.lane.b32.xlu2 %v2196_v5, %s1983_s9  ;;  %459 = vrot.lane.b32.xlu1 %v2202_v6, %s1983_s9 }
  0xa4   : > { %v258_v24 = vpop.permute.xlu0 %257  ;;  %1818 = vset.pattern.permute.xlu0 %v1986_v29 }
  0xa5   : > { %v2255_v23 = vpop.permute.xlu2 %315  ;;  %v262_v25 = vpop.permute.xlu1 %261  ;;  %548 = vperm.xlu0 %1818, %v2190_v3   ;;  %v270_v38 = vsel %vm267_vm0, %v258_v24, %v260_v21  ;;  %v271_v41 = vsel %vm267_vm0, %v264_v14, %v258_v24 }
  0xa6   : > { %v268_v42 = vsel %vm267_vm0, %v262_v25, %v264_v14  ;;  %v269_v43 = vsel %vm267_vm0, %v260_v21, %v262_v25  ;;  %v276_v46 = vmul.f32 %v2242_v16, %v270_v38  ;;  %v279_v52 = vmul.f32 %v2242_v16, %v271_v41 }
  0xa7   : > { %v277_v58 = vmul.f32 %v2242_v16, %v269_v43  ;;  %v278_v59 = vmul.f32 %v2242_v16, %v268_v42  ;;  %v321_v1 = vsel %vm317_vm1, %v2255_v23, %v2251_v20  ;;  %vm667_vm0 = vcmp.lt.s32.totalorder %v2267_v34, 81 }
  0xa8   : > { %v280_v9 = vadd.f32 %v276_v46, %v253_v44  ;;  %v283_v10 = vadd.f32 %v279_v52, %v256_v40 }
  0xa9   : > { %v281_v12 = vadd.f32 %v277_v58, %v254_v39  ;;  %v282_v13 = vadd.f32 %v278_v59, %v255_v57 }
  0xab   : > { %465 = vrot.lane.b32.xlu2 %v2193_v4, %s1983_s9  ;;  %463 = vrot.lane.b32.xlu1 %v2205_v7, %s1983_s9  ;;  %s2011_s9 = smov 60  }
  0xac   : > { %v285_v27 = vpop.permute.xlu0 %284 }
  0xad   : > { %v2260_v26 = vpop.permute.xlu2 %336  ;;  %v287_v28 = vpop.permute.xlu1 %286  ;;  %1819 = vset.pattern.permute.xlu0 %v1988_v45 }
  0xae   : > { %573 = vperm.xlu0 %1819, %v2190_v3   ;;  %v295_v60 = vsel %vm292_vm2, %v285_v27, %v287_v28  ;;  %v294_v61 = vsel %vm292_vm2, %v287_v28, %v2246_v18 }
  0xb3   : > { %486 = vrot.lane.b32.xlu2 %v2196_v5, %s1985_s10  ;;  %484 = vrot.lane.b32.xlu1 %v2202_v6, %s1985_s10 }
  0xb4   : > { %v291_v31 = vpop.permute.xlu0 %290 }
  0xb5   : > { %v2264_v30 = vpop.permute.xlu2 %340  ;;  %v299_v32 = vpop.permute.xlu1 %298  ;;  %v296_v47 = vsel %vm292_vm2, %v291_v31, %v285_v27  ;;  %v293_v53 = vsel %vm292_vm2, %v2246_v18, %v291_v31  ;;  %vm717_vm2 = vcmp.lt.s32.totalorder %v2267_v34, 79 }
  0xb6   : > { %v301_v62 = vmul.f32 %v299_v32, %v295_v60  ;;  %v304_v63 = vmul.f32 %v299_v32, %v296_v47  ;;  %v302_v2 = vmul.f32 %v299_v32, %v294_v61  ;;  %v303_v8 = vmul.f32 %v299_v32, %v293_v53 }
  0xb8   : > { %v305_v15 = vadd.f32 %v301_v62, %v280_v9  ;;  %v308_v16 = vadd.f32 %v304_v63, %v283_v10  ;;  %v306_v18 = vadd.f32 %v302_v2, %v281_v12  ;;  %v307_v19 = vadd.f32 %v303_v8, %v282_v13 }
  0xbb   : > { %490 = vrot.lane.b32.xlu2 %v2193_v4, %s1985_s10  ;;  %488 = vrot.lane.b32.xlu1 %v2205_v7, %s1985_s10  ;;  %s2013_s10 = smov 59  }
  0xbc   : > { %v312_v36 = vpop.permute.xlu0 %311 }
  0xbd   : > { %v2271_v35 = vpop.permute.xlu2 %361  ;;  %v314_v37 = vpop.permute.xlu1 %313  ;;  %v320_v49 = vsel %vm317_vm1, %v2251_v20, %v312_v36 }
  0xbe   : > { %v319_v48 = vsel %vm317_vm1, %v312_v36, %v314_v37  ;;  %v318_v14 = vsel %vm317_vm1, %v314_v37, %v2255_v23  ;;  %vm692_vm1 = vcmp.lt.s32.totalorder %v2267_v34, 80 }
  0xc3   : > { %511 = vrot.lane.b32.xlu2 %v2196_v5, %s1987_s11  ;;  %509 = vrot.lane.b32.xlu1 %v2202_v6, %s1987_s11 }
  0xc4   : > { %v324_v51 = vpop.permute.xlu0 %323 }
  0xc5   : > { %v2291_v50 = vpop.permute.xlu2 %365  ;;  %v335_v54 = vpop.permute.xlu1 %334  ;;  %v326_v55 = vmul.f32 %v324_v51, %v320_v49  ;;  %v327_v56 = vmul.f32 %v324_v51, %v319_v48  ;;  %v329_v11 = vmul.f32 %v324_v51, %v321_v1  ;;  %v328_v17 = vmul.f32 %v324_v51, %v318_v14 }
  0xc6   : > { %v2323_v21 = vsel %vm342_vm3, %v335_v54, %v2260_v26  ;;  %v2328_v22 = vsel %vm342_vm3, %v2264_v30, %v335_v54 }
  0xc7   : > { %v330_v23 = vadd.f32 %v326_v55, %v305_v15  ;;  %v333_v24 = vadd.f32 %v329_v11, %v308_v16  ;;  %v331_v33 = vadd.f32 %v327_v56, %v306_v18  ;;  %v332_v36 = vadd.f32 %v328_v17, %v307_v19 }
  0xc8   : > { %v1994_v18 = vmov 16  }
  0xcb   : > { %515 = vrot.lane.b32.xlu2 %v2193_v4, %s1987_s11  ;;  %513 = vrot.lane.b32.xlu1 %v2205_v7, %s1987_s11  ;;  %s2015_s11 = smov 58  }
  0xcd   : > { %v2318_v20 = vpop.permute.xlu2 %386  ;;  %v339_v25 = vpop.permute.xlu1 %338 }
  0xce   : > { %v349_v27 = vpop.permute.xlu0 %348  ;;  %v2333_v28 = vsel %vm342_vm3, %v339_v25, %v2264_v30  ;;  %v2338_v29 = vsel %vm342_vm3, %v2260_v26, %v339_v25  ;;  %v1990_v26 = vmov 14   ;;  %vm742_vm3 = vcmp.lt.s32.totalorder %v2267_v34, 78 }
  0xcf   : > { %v351_v31 = vmul.f32 %v349_v27, %v2323_v21  ;;  %v354_v32 = vmul.f32 %v349_v27, %v2328_v22  ;;  %v352_v37 = vmul.f32 %v349_v27, %v2338_v29  ;;  %v353_v38 = vmul.f32 %v349_v27, %v2333_v28  ;;  %1820 = vset.pattern.permute.xlu0 %v1990_v26 }
  0xd0   : > { %598 = vperm.xlu0 %1820, %v2190_v3  }
  0xd1   : > { %v355_v39 = vadd.f32 %v351_v31, %v330_v23  ;;  %v358_v40 = vadd.f32 %v354_v32, %v333_v24  ;;  %v356_v41 = vadd.f32 %v352_v37, %v331_v33  ;;  %v357_v30 = vadd.f32 %v353_v38, %v332_v36 }
  0xd3   : > { %536 = vrot.lane.b32.xlu2 %v2196_v5, %s1989_s12  ;;  %534 = vrot.lane.b32.xlu1 %v2202_v6, %s1989_s12 }
  0xd5   : > { %v391_v42 = vpop.permute.xlu2 %390  ;;  %v360_v43 = vpop.permute.xlu1 %359 }
  0xd6   : > { %v2351_v44 = vsel %vm367_vm4, %v360_v43, %v2271_v35  ;;  %v2356_v45 = vsel %vm367_vm4, %v2291_v50, %v360_v43 }
  0xd7   : > { %v374_v46 = vpop.permute.xlu0 %373 }
  0xd8   : > { %v376_v47 = vmul.f32 %v374_v46, %v2351_v44  ;;  %v379_v48 = vmul.f32 %v374_v46, %v2356_v45 }
  0xda   : > { %v380_v49 = vadd.f32 %v376_v47, %v355_v39  ;;  %v383_v51 = vadd.f32 %v379_v48, %v358_v40 }
  0xdb   : > { %540 = vrot.lane.b32.xlu2 %v2193_v4, %s1989_s12  ;;  %538 = vrot.lane.b32.xlu1 %v2205_v7, %s1989_s12  ;;  %s2039_s12 = smov 13  }
  0xdd   : > { %v412_v52 = vpop.permute.xlu2 %411  ;;  %v364_v53 = vpop.permute.xlu1 %363 }
  0xde   : > { %v2365_v54 = vsel %vm367_vm4, %v364_v53, %v2291_v50  ;;  %v2370_v55 = vsel %vm367_vm4, %v2271_v35, %v364_v53  ;;  %v1992_v50 = vmov 15   ;;  %vm767_vm4 = vcmp.lt.s32.totalorder %v2267_v34, 62 }
  0xdf   : > { %v377_v56 = vmul.f32 %v374_v46, %v2370_v55  ;;  %v378_v57 = vmul.f32 %v374_v46, %v2365_v54  ;;  %1821 = vset.pattern.permute.xlu0 %v1992_v50 }
  0xe0   : > { %v399_v61 = vpop.permute.xlu0 %398  ;;  %623 = vperm.xlu0 %1821, %v2190_v3  }
  0xe1   : > { %v381_v58 = vadd.f32 %v377_v56, %v356_v41  ;;  %v382_v59 = vadd.f32 %v378_v57, %v357_v30 }
  0xe3   : > { %561 = vrot.lane.b32.xlu2 %v2196_v5, %s1991_s13  ;;  %559 = vrot.lane.b32.xlu1 %v2202_v6, %s1991_s13 }
  0xe5   : > { %v416_v60 = vpop.permute.xlu2 %415  ;;  %v385_v35 = vpop.permute.xlu1 %384 }
  0xe6   : > { %v2381_v62 = vsel %vm392_vm5, %v385_v35, %v2318_v20  ;;  %v2385_v63 = vsel %vm392_vm5, %v391_v42, %v385_v35 }
  0xe7   : > { %v401_v1 = vmul.f32 %v399_v61, %v2381_v62  ;;  %v404_v2 = vmul.f32 %v399_v61, %v2385_v63 }
  0xe8   : > { %1822 = vset.pattern.permute.xlu0 %v1994_v18 }
  0xe9   : > { %v405_v8 = vadd.f32 %v401_v1, %v380_v49  ;;  %v408_v9 = vadd.f32 %v404_v2, %v383_v51  ;;  %v424_v23 = vpop.permute.xlu0 %423  ;;  %648 = vperm.xlu0 %1822, %v2190_v3   ;;  %v1998_v2 = vmov 18  }
  0xeb   : > { %565 = vrot.lane.b32.xlu2 %v2193_v4, %s1991_s13  ;;  %563 = vrot.lane.b32.xlu1 %v2205_v7, %s1991_s13  ;;  %s2040_s13 = smov 18  }
  0xed   : > { %v437_v10 = vpop.permute.xlu2 %436  ;;  %v389_v11 = vpop.permute.xlu1 %388 }
  0xee   : > { %v2393_v12 = vsel %vm392_vm5, %v389_v11, %v391_v42  ;;  %v2398_v13 = vsel %vm392_vm5, %v2318_v20, %v389_v11  ;;  %v1996_v42 = vmov 17   ;;  %vm792_vm5 = vcmp.lt.s32.totalorder %v2267_v34, 61 }
  0xef   : > { %v402_v14 = vmul.f32 %v399_v61, %v2398_v13  ;;  %v403_v15 = vmul.f32 %v399_v61, %v2393_v12 }
  0xf1   : > { %v406_v16 = vadd.f32 %v402_v14, %v381_v58  ;;  %v407_v17 = vadd.f32 %v403_v15, %v382_v59  ;;  %1823 = vset.pattern.permute.xlu0 %v1996_v42 }
  0xf2   : > { %v449_v46 = vpop.permute.xlu0 %448  ;;  %673 = vperm.xlu0 %1823, %v2190_v3  }
  0xf3   : > { %586 = vrot.lane.b32.xlu2 %v2196_v5, %s1993_s15  ;;  %584 = vrot.lane.b32.xlu1 %v2202_v6, %s1993_s15 }
  0xf5   : > { %v441_v19 = vpop.permute.xlu2 %440  ;;  %v410_v20 = vpop.permute.xlu1 %409 }
  0xf6   : > { %v420_v24 = vsel %vm417_vm6, %v410_v20, %v412_v52  ;;  %v421_v25 = vsel %vm417_vm6, %v416_v60, %v410_v20 }
  0xf7   : > { %v426_v27 = vmul.f32 %v424_v23, %v420_v24  ;;  %v429_v31 = vmul.f32 %v424_v23, %v421_v25 }
  0xf9   : > { %v430_v32 = vadd.f32 %v426_v27, %v405_v8  ;;  %v433_v33 = vadd.f32 %v429_v31, %v408_v9 }
  0xfa   : > { %1824 = vset.pattern.permute.xlu0 %v1998_v2 }
  0xfb   : > { %590 = vrot.lane.b32.xlu2 %v2193_v4, %s1993_s15  ;;  %588 = vrot.lane.b32.xlu1 %v2205_v7, %s1993_s15  ;;  %v474_v9 = vpop.permute.xlu0 %473  ;;  %s2017_s15 = smov 57  }
  0xfc   : > { %698 = vperm.xlu0 %1824, %v2190_v3  }
  0xfd   : > { %v462_v36 = vpop.permute.xlu2 %461  ;;  %v414_v37 = vpop.permute.xlu1 %413 }
  0xfe   : > { %v418_v38 = vsel %vm417_vm6, %v414_v37, %v416_v60  ;;  %v419_v39 = vsel %vm417_vm6, %v412_v52, %v414_v37  ;;  %vm817_vm6 = vcmp.lt.s32.totalorder %v2267_v34, 60 }
  0xff   : > { %v427_v40 = vmul.f32 %v424_v23, %v419_v39  ;;  %v428_v41 = vmul.f32 %v424_v23, %v418_v38 }
 0x101   : > { %v431_v30 = vadd.f32 %v427_v40, %v406_v16  ;;  %v432_v26 = vadd.f32 %v428_v41, %v407_v17 }
 0x103   : > { %611 = vrot.lane.b32.xlu2 %v2196_v5, %s1995_s29  ;;  %609 = vrot.lane.b32.xlu1 %v2202_v6, %s1995_s29 }
 0x104   : > { %v499_v38 = vpop.permute.xlu0 %498 }
 0x105   : > { %v466_v43 = vpop.permute.xlu2 %465  ;;  %v435_v47 = vpop.permute.xlu1 %434 }
 0x106   : > { %v445_v48 = vsel %vm442_vm7, %v435_v47, %v437_v10  ;;  %v446_v49 = vsel %vm442_vm7, %v441_v19, %v435_v47 }
 0x107   : > { %v451_v51 = vmul.f32 %v449_v46, %v445_v48  ;;  %v454_v52 = vmul.f32 %v449_v46, %v446_v49 }
 0x109   : > { %v455_v53 = vadd.f32 %v451_v51, %v430_v32  ;;  %v458_v56 = vadd.f32 %v454_v52, %v433_v33  ;;  %v2000_v33 = vmov 19  }
 0x10a   : > { %1825 = vset.pattern.permute.xlu0 %v2000_v33 }
 0x10b   : > { %615 = vrot.lane.b32.xlu2 %v2193_v4, %s1995_s29  ;;  %613 = vrot.lane.b32.xlu1 %v2205_v7, %s1995_s29  ;;  %s2019_s29 = smov 56  }
 0x10c   : > { %723 = vperm.xlu0 %1825, %v2190_v3  }
 0x10d   : > { %v487_v57 = vpop.permute.xlu2 %486  ;;  %v439_v58 = vpop.permute.xlu1 %438 }
 0x10e   : > { %v443_v59 = vsel %vm442_vm7, %v439_v58, %v441_v19  ;;  %v444_v50 = vsel %vm442_vm7, %v437_v10, %v439_v58  ;;  %vm842_vm7 = vcmp.lt.s32.totalorder %v2267_v34, 59 }
 0x10f   : > { %v452_v60 = vmul.f32 %v449_v46, %v444_v50  ;;  %v453_v61 = vmul.f32 %v449_v46, %v443_v59  ;;  %v524_v59 = vpop.permute.xlu0 %523 }
 0x111   : > { %v456_v35 = vadd.f32 %v452_v60, %v431_v30  ;;  %v457_v1 = vadd.f32 %v453_v61, %v432_v26 }
 0x113   : > { %636 = vrot.lane.b32.xlu2 %v2196_v5, %s1997_s16  ;;  %634 = vrot.lane.b32.xlu1 %v2202_v6, %s1997_s16 }
 0x115   : > { %v491_v8 = vpop.permute.xlu2 %490  ;;  %v460_v11 = vpop.permute.xlu1 %459 }
 0x116   : > { %v470_v10 = vsel %vm467_vm8, %v460_v11, %v462_v36  ;;  %v471_v14 = vsel %vm467_vm8, %v466_v43, %v460_v11 }
 0x117   : > { %v476_v15 = vmul.f32 %v474_v9, %v470_v10  ;;  %v479_v16 = vmul.f32 %v474_v9, %v471_v14 }
 0x119   : > { %v480_v17 = vadd.f32 %v476_v15, %v455_v53  ;;  %v483_v18 = vadd.f32 %v479_v16, %v458_v56  ;;  %v2002_v56 = vmov 20  }
 0x11a   : > { %1826 = vset.pattern.permute.xlu0 %v2002_v56 }
 0x11b   : > { %640 = vrot.lane.b32.xlu2 %v2193_v4, %s1997_s16  ;;  %638 = vrot.lane.b32.xlu1 %v2205_v7, %s1997_s16  ;;  %s2021_s16 = smov 40  }
 0x11c   : > { %748 = vperm.xlu0 %1826, %v2190_v3  }
 0x11d   : > { %v512_v19 = vpop.permute.xlu2 %511  ;;  %v464_v23 = vpop.permute.xlu1 %463 }
 0x11e   : > { %v468_v20 = vsel %vm467_vm8, %v464_v23, %v466_v43  ;;  %v469_v24 = vsel %vm467_vm8, %v462_v36, %v464_v23  ;;  %vm867_vm8 = vcmp.lt.s32.totalorder %v2267_v34, 58 }
 0x11f   : > { %v477_v25 = vmul.f32 %v474_v9, %v469_v24  ;;  %v478_v27 = vmul.f32 %v474_v9, %v468_v20  ;;  %v549_v20 = vpop.permute.xlu0 %548 }
 0x121   : > { %v481_v31 = vadd.f32 %v477_v25, %v456_v35  ;;  %v482_v32 = vadd.f32 %v478_v27, %v457_v1 }
 0x123   : > { %661 = vrot.lane.b32.xlu2 %v2196_v5, %s1999_s17  ;;  %659 = vrot.lane.b32.xlu1 %v2202_v6, %s1999_s17 }
 0x125   : > { %v516_v37 = vpop.permute.xlu2 %515  ;;  %v485_v39 = vpop.permute.xlu1 %484 }
 0x126   : > { %v495_v36 = vsel %vm492_vm9, %v485_v39, %v487_v57  ;;  %v496_v40 = vsel %vm492_vm9, %v491_v8, %v485_v39 }
 0x127   : > { %v501_v41 = vmul.f32 %v499_v38, %v495_v36  ;;  %v504_v30 = vmul.f32 %v499_v38, %v496_v40 }
 0x129   : > { %v505_v26 = vadd.f32 %v501_v41, %v480_v17  ;;  %v508_v42 = vadd.f32 %v504_v30, %v483_v18  ;;  %v2004_v18 = vmov 21  }
 0x12a   : > { %1827 = vset.pattern.permute.xlu0 %v2004_v18 }
 0x12b   : > { %665 = vrot.lane.b32.xlu2 %v2193_v4, %s1999_s17  ;;  %663 = vrot.lane.b32.xlu1 %v2205_v7, %s1999_s17  ;;  %s2023_s17 = smov 39  }
 0x12c   : > { %773 = vperm.xlu0 %1827, %v2190_v3  }
 0x12d   : > { %v537_v43 = vpop.permute.xlu2 %536  ;;  %v489_v46 = vpop.permute.xlu1 %488 }
 0x12e   : > { %v493_v47 = vsel %vm492_vm9, %v489_v46, %v491_v8  ;;  %v494_v48 = vsel %vm492_vm9, %v487_v57, %v489_v46  ;;  %vm892_vm9 = vcmp.lt.s32.totalorder %v2267_v34, 57 }
 0x12f   : > { %v502_v49 = vmul.f32 %v499_v38, %v494_v48  ;;  %v503_v51 = vmul.f32 %v499_v38, %v493_v47  ;;  %v574_v47 = vpop.permute.xlu0 %573 }
 0x131   : > { %v506_v52 = vadd.f32 %v502_v49, %v481_v31  ;;  %v507_v53 = vadd.f32 %v503_v51, %v482_v32 }
 0x133   : > { %686 = vrot.lane.b32.xlu2 %v2196_v5, %s2001_s23  ;;  %684 = vrot.lane.b32.xlu1 %v2202_v6, %s2001_s23 }
 0x135   : > { %v541_v58 = vpop.permute.xlu2 %540  ;;  %v510_v50 = vpop.permute.xlu1 %509 }
 0x136   : > { %v520_v57 = vsel %vm517_vm10, %v510_v50, %v512_v19  ;;  %v521_v60 = vsel %vm517_vm10, %v516_v37, %v510_v50 }
 0x137   : > { %v526_v61 = vmul.f32 %v524_v59, %v520_v57  ;;  %v529_v35 = vmul.f32 %v524_v59, %v521_v60 }
 0x139   : > { %v530_v1 = vadd.f32 %v526_v61, %v505_v26  ;;  %v533_v2 = vadd.f32 %v529_v35, %v508_v42  ;;  %v2006_v42 = vmov 22  }
 0x13a   : > { %1828 = vset.pattern.permute.xlu0 %v2006_v42 }
 0x13b   : > { %690 = vrot.lane.b32.xlu2 %v2193_v4, %s2001_s23  ;;  %688 = vrot.lane.b32.xlu1 %v2205_v7, %s2001_s23  ;;  %s2025_s23 = smov 38  }
 0x13c   : > { %798 = vperm.xlu0 %1828, %v2190_v3  }
 0x13d   : > { %v562_v8 = vpop.permute.xlu2 %561  ;;  %v514_v9 = vpop.permute.xlu1 %513 }
 0x13e   : > { %v518_v11 = vsel %vm517_vm10, %v514_v9, %v516_v37  ;;  %v519_v10 = vsel %vm517_vm10, %v512_v19, %v514_v9  ;;  %vm917_vm10 = vcmp.lt.s32.totalorder %v2267_v34, 56 }
 0x13f   : > { %v527_v14 = vmul.f32 %v524_v59, %v519_v10  ;;  %v528_v15 = vmul.f32 %v524_v59, %v518_v11 }
 0x141   : > { %v531_v16 = vadd.f32 %v527_v14, %v506_v52  ;;  %v532_v17 = vadd.f32 %v528_v15, %v507_v53 }
 0x142   : > { %v599_v11 = vpop.permute.xlu0 %598 }
 0x143   : > { %711 = vrot.lane.b32.xlu2 %v2196_v5, %s2003_s25  ;;  %709 = vrot.lane.b32.xlu1 %v2202_v6, %s2003_s25 }
 0x145   : > { %v566_v23 = vpop.permute.xlu2 %565  ;;  %v535_v24 = vpop.permute.xlu1 %534 }
 0x146   : > { %v545_v19 = vsel %vm542_vm11, %v535_v24, %v537_v43  ;;  %v546_v25 = vsel %vm542_vm11, %v541_v58, %v535_v24 }
 0x147   : > { %v551_v27 = vmul.f32 %v549_v20, %v545_v19  ;;  %v554_v31 = vmul.f32 %v549_v20, %v546_v25 }
 0x149   : > { %v555_v32 = vadd.f32 %v551_v27, %v530_v1  ;;  %v558_v33 = vadd.f32 %v554_v31, %v533_v2  ;;  %v2008_v2 = vmov 23  }
 0x14a   : > { %1829 = vset.pattern.permute.xlu0 %v2008_v2 }
 0x14b   : > { %715 = vrot.lane.b32.xlu2 %v2193_v4, %s2003_s25  ;;  %713 = vrot.lane.b32.xlu1 %v2205_v7, %s2003_s25  ;;  %s2027_s25 = smov 37  }
 0x14c   : > { %823 = vperm.xlu0 %1829, %v2190_v3  }
 0x14d   : > { %v587_v37 = vpop.permute.xlu2 %586  ;;  %v539_v38 = vpop.permute.xlu1 %538 }
 0x14e   : > { %v543_v39 = vsel %vm542_vm11, %v539_v38, %v541_v58  ;;  %v544_v36 = vsel %vm542_vm11, %v537_v43, %v539_v38  ;;  %vm942_vm11 = vcmp.lt.s32.totalorder %v2267_v34, 40 }
 0x14f   : > { %v552_v40 = vmul.f32 %v549_v20, %v544_v36  ;;  %v553_v41 = vmul.f32 %v549_v20, %v543_v39 }
 0x151   : > { %v556_v30 = vadd.f32 %v552_v40, %v531_v16  ;;  %v557_v26 = vadd.f32 %v553_v41, %v532_v17 }
 0x152   : > { %v624_v39 = vpop.permute.xlu0 %623 }
 0x153   : > { %736 = vrot.lane.b32.xlu2 %v2196_v5, %s2005_s26  ;;  %734 = vrot.lane.b32.xlu1 %v2202_v6, %s2005_s26 }
 0x155   : > { %v591_v46 = vpop.permute.xlu2 %590  ;;  %v560_v48 = vpop.permute.xlu1 %559 }
 0x156   : > { %v570_v43 = vsel %vm567_vm12, %v560_v48, %v562_v8  ;;  %v571_v49 = vsel %vm567_vm12, %v566_v23, %v560_v48 }
 0x157   : > { %v576_v51 = vmul.f32 %v574_v47, %v570_v43  ;;  %v579_v52 = vmul.f32 %v574_v47, %v571_v49 }
 0x159   : > { %v580_v53 = vadd.f32 %v576_v51, %v555_v32  ;;  %v583_v56 = vadd.f32 %v579_v52, %v558_v33  ;;  %v2010_v33 = vmov 24  }
 0x15a   : > { %1830 = vset.pattern.permute.xlu0 %v2010_v33 }
 0x15b   : > { %740 = vrot.lane.b32.xlu2 %v2193_v4, %s2005_s26  ;;  %738 = vrot.lane.b32.xlu1 %v2205_v7, %s2005_s26  ;;  %s2030_s26 = smov 36  }
 0x15c   : > { %848 = vperm.xlu0 %1830, %v2190_v3  }
 0x15d   : > { %v612_v58 = vpop.permute.xlu2 %611  ;;  %v564_v59 = vpop.permute.xlu1 %563 }
 0x15e   : > { %v568_v50 = vsel %vm567_vm12, %v564_v59, %v566_v23  ;;  %v569_v57 = vsel %vm567_vm12, %v562_v8, %v564_v59  ;;  %vm967_vm12 = vcmp.lt.s32.totalorder %v2267_v34, 39 }
 0x15f   : > { %v577_v60 = vmul.f32 %v574_v47, %v569_v57  ;;  %v578_v61 = vmul.f32 %v574_v47, %v568_v50  ;;  %v649_v50 = vpop.permute.xlu0 %648 }
 0x161   : > { %v581_v35 = vadd.f32 %v577_v60, %v556_v30  ;;  %v582_v1 = vadd.f32 %v578_v61, %v557_v26 }
 0x163   : > { %761 = vrot.lane.b32.xlu2 %v2196_v5, %s2007_s8  ;;  %759 = vrot.lane.b32.xlu1 %v2202_v6, %s2007_s8 }
 0x165   : > { %v616_v9 = vpop.permute.xlu2 %615  ;;  %v585_v10 = vpop.permute.xlu1 %584 }
 0x166   : > { %v595_v8 = vsel %vm592_vm13, %v585_v10, %v587_v37  ;;  %v596_v14 = vsel %vm592_vm13, %v591_v46, %v585_v10 }
 0x167   : > { %v601_v15 = vmul.f32 %v599_v11, %v595_v8  ;;  %v604_v16 = vmul.f32 %v599_v11, %v596_v14 }
 0x169   : > { %v605_v17 = vadd.f32 %v601_v15, %v580_v53  ;;  %v608_v18 = vadd.f32 %v604_v16, %v583_v56  ;;  %v2012_v56 = vmov 25  }
 0x16a   : > { %1831 = vset.pattern.permute.xlu0 %v2012_v56  ;;  %v2580_v56 = vld [vmem:[%s2180_s14 + $0x10] sm:$0xff] }
 0x16b   : > { %765 = vrot.lane.b32.xlu2 %v2193_v4, %s2007_s8  ;;  %763 = vrot.lane.b32.xlu1 %v2205_v7, %s2007_s8  ;;  %s2032_s8 = smov 16  }
 0x16c   : > { %873 = vperm.xlu0 %1831, %v2190_v3  }
 0x16d   : > { %v637_v23 = vpop.permute.xlu2 %636  ;;  %v589_v20 = vpop.permute.xlu1 %588 }
 0x16e   : > { %v593_v24 = vsel %vm592_vm13, %v589_v20, %v591_v46  ;;  %v594_v19 = vsel %vm592_vm13, %v587_v37, %v589_v20  ;;  %vm992_vm13 = vcmp.lt.s32.totalorder %v2267_v34, 38 }
 0x16f   : > { %v602_v25 = vmul.f32 %v599_v11, %v594_v19  ;;  %v603_v27 = vmul.f32 %v599_v11, %v593_v24  ;;  %v674_v24 = vpop.permute.xlu0 %673 }
 0x171   : > { %v606_v31 = vadd.f32 %v602_v25, %v581_v35  ;;  %v607_v32 = vadd.f32 %v603_v27, %v582_v1 }
 0x173   : > { %786 = vrot.lane.b32.xlu2 %v2196_v5, %s2009_s28  ;;  %784 = vrot.lane.b32.xlu1 %v2202_v6, %s2009_s28 }
 0x175   : > { %v641_v38 = vpop.permute.xlu2 %640  ;;  %v610_v36 = vpop.permute.xlu1 %609 }
 0x176   : > { %v620_v37 = vsel %vm617_vm14, %v610_v36, %v612_v58  ;;  %v621_v40 = vsel %vm617_vm14, %v616_v9, %v610_v36 }
 0x177   : > { %v626_v41 = vmul.f32 %v624_v39, %v620_v37  ;;  %v629_v30 = vmul.f32 %v624_v39, %v621_v40 }
 0x179   : > { %v630_v26 = vadd.f32 %v626_v41, %v605_v17  ;;  %v633_v42 = vadd.f32 %v629_v30, %v608_v18  ;;  %v2014_v18 = vmov 26   ;;  %v2557_v41 = vld [vmem:[%s2180_s14 + $0x8] sm:$0xff] }
 0x17a   : > { %1832 = vset.pattern.permute.xlu0 %v2014_v18 }
 0x17b   : > { %790 = vrot.lane.b32.xlu2 %v2193_v4, %s2009_s28  ;;  %788 = vrot.lane.b32.xlu1 %v2205_v7, %s2009_s28  ;;  %s2033_s28 = smov 35  }
 0x17c   : > { %898 = vperm.xlu0 %1832, %v2190_v3  }
 0x17d   : > { %v662_v46 = vpop.permute.xlu2 %661  ;;  %v614_v47 = vpop.permute.xlu1 %613 }
 0x17e   : > { %v618_v48 = vsel %vm617_vm14, %v614_v47, %v616_v9  ;;  %v619_v43 = vsel %vm617_vm14, %v612_v58, %v614_v47  ;;  %vm1017_vm14 = vcmp.lt.s32.totalorder %v2267_v34, 37 }
 0x17f   : > { %v627_v49 = vmul.f32 %v624_v39, %v619_v43  ;;  %v628_v51 = vmul.f32 %v624_v39, %v618_v48 }
 0x181   : > { %v631_v52 = vadd.f32 %v627_v49, %v606_v31  ;;  %v632_v53 = vadd.f32 %v628_v51, %v607_v32 }
 0x183   : > { %811 = vrot.lane.b32.xlu2 %v2196_v5, %s2011_s9  ;;  %809 = vrot.lane.b32.xlu1 %v2202_v6, %s2011_s9 }
 0x185   : > { %v666_v59 = vpop.permute.xlu2 %665  ;;  %v635_v57 = vpop.permute.xlu1 %634 }
 0x186   : > { %v645_v58 = vsel %vm642_vm15, %v635_v57, %v637_v23  ;;  %v646_v60 = vsel %vm642_vm15, %v641_v38, %v635_v57 }
 0x187   : > { %v651_v61 = vmul.f32 %v649_v50, %v645_v58  ;;  %v654_v35 = vmul.f32 %v649_v50, %v646_v60 }
 0x189   : > { %v655_v1 = vadd.f32 %v651_v61, %v630_v26  ;;  %v658_v2 = vadd.f32 %v654_v35, %v633_v42  ;;  %v699_v26 = vpop.permute.xlu0 %698  ;;  %v2568_v42 = vld [vmem:[%s3103_s1] sm:$0xff] }
 0x18b   : > { %815 = vrot.lane.b32.xlu2 %v2193_v4, %s2011_s9  ;;  %813 = vrot.lane.b32.xlu1 %v2205_v7, %s2011_s9  ;;  %s2035_s9 = smov 17  }
 0x18d   : > { %v687_v9 = vpop.permute.xlu2 %686  ;;  %v639_v11 = vpop.permute.xlu1 %638 }
 0x18e   : > { %v643_v10 = vsel %vm642_vm15, %v639_v11, %v641_v38  ;;  %v644_v8 = vsel %vm642_vm15, %v637_v23, %v639_v11  ;;  %vm1042_vm15 = vcmp.lt.s32.totalorder %v2267_v34, 36 }
 0x18f   : > { %v652_v14 = vmul.f32 %v649_v50, %v644_v8  ;;  %v653_v15 = vmul.f32 %v649_v50, %v643_v10 }
 0x191   : > { %v656_v16 = vadd.f32 %v652_v14, %v631_v52  ;;  %v657_v17 = vadd.f32 %v653_v15, %v632_v53  ;;  %v2576_v53 = vld [vmem:[%s2180_s14 + $0x18] sm:$0xff]  ;;  %v724_v10 = vpop.permute.xlu0 %723 }
 0x193   : > { %836 = vrot.lane.b32.xlu2 %v2196_v5, %s2013_s10  ;;  %834 = vrot.lane.b32.xlu1 %v2202_v6, %s2013_s10 }
 0x195   : > { %v691_v20 = vpop.permute.xlu2 %690  ;;  %v660_v19 = vpop.permute.xlu1 %659 }
 0x196   : > { %v670_v23 = vsel %vm667_vm0, %v660_v19, %v662_v46  ;;  %v671_v25 = vsel %vm667_vm0, %v666_v59, %v660_v19 }
 0x197   : > { %v676_v27 = vmul.f32 %v674_v24, %v670_v23  ;;  %v679_v5 = vmul.f32 %v674_v24, %v671_v25 }
 0x199   : > { %v680_v6 = vadd.f32 %v676_v27, %v655_v1  ;;  %v683_v31 = vadd.f32 %v679_v5, %v658_v2  ;;  %v2018_v2 = vmov 28  }
 0x19b   : > { %840 = vrot.lane.b32.xlu2 %v2193_v4, %s2013_s10  ;;  %838 = vrot.lane.b32.xlu1 %v2205_v7, %s2013_s10  ;;  %v2561_v4 = vld [vmem:[%s2180_s14] sm:$0xff]  ;;  %v2016_v7 = vmov 27   ;;  %s2036_s10 = smov 34  }
 0x19c   : > { %1833 = vset.pattern.permute.xlu0 %v2016_v7 }
 0x19d   : > { %v712_v32 = vpop.permute.xlu2 %711  ;;  %v664_v33 = vpop.permute.xlu1 %663  ;;  %923 = vperm.xlu0 %1833, %v2568_v42  }
 0x19e   : > { %v668_v3 = vsel %vm667_vm0, %v664_v33, %v666_v59  ;;  %v669_v38 = vsel %vm667_vm0, %v662_v46, %v664_v33  ;;  %vm1067_vm0 = vcmp.lt.s32.totalorder %v2267_v34, 35 }
 0x19f   : > { %v677_v39 = vmul.f32 %v674_v24, %v669_v38  ;;  %v678_v36 = vmul.f32 %v674_v24, %v668_v3  ;;  %v749_v3 = vpop.permute.xlu0 %748 }
 0x1a1   : > { %v681_v37 = vadd.f32 %v677_v39, %v656_v16  ;;  %v682_v40 = vadd.f32 %v678_v36, %v657_v17 }
 0x1a3   : > { %861 = vrot.lane.b32.xlu2 %v2557_v41, %s2015_s11  ;;  %859 = vrot.lane.b32.xlu1 %v2561_v4, %s2015_s11 }
 0x1a5   : > { %v716_v30 = vpop.permute.xlu2 %715  ;;  %v685_v46 = vpop.permute.xlu1 %684  ;;  %1834 = vset.pattern.permute.xlu0 %v2018_v2 }
 0x1a6   : > { %v695_v47 = vsel %vm692_vm1, %v685_v46, %v687_v9  ;;  %v696_v48 = vsel %vm692_vm1, %v691_v20, %v685_v46  ;;  %948 = vperm.xlu0 %1834, %v2568_v42  }
 0x1a7   : > { %v701_v43 = vmul.f32 %v699_v26, %v695_v47  ;;  %v704_v49 = vmul.f32 %v699_v26, %v696_v48 }
 0x1a9   : > { %v705_v51 = vadd.f32 %v701_v43, %v680_v6  ;;  %v708_v52 = vadd.f32 %v704_v49, %v683_v31  ;;  %v2020_v31 = vmov 29  }
 0x1ab   : > { %865 = vrot.lane.b32.xlu2 %v2576_v53, %s2015_s11  ;;  %863 = vrot.lane.b32.xlu1 %v2580_v56, %s2015_s11  ;;  %s2037_s11 = smov 14  }
 0x1ad   : > { %v737_v59 = vpop.permute.xlu2 %736  ;;  %v689_v50 = vpop.permute.xlu1 %688 }
 0x1ae   : > { %v693_v57 = vsel %vm692_vm1, %v689_v50, %v691_v20  ;;  %v694_v58 = vsel %vm692_vm1, %v687_v9, %v689_v50  ;;  %1835 = vset.pattern.permute.xlu0 %v2020_v31  ;;  %vm1092_vm1 = vcmp.lt.s32.totalorder %v2267_v34, 34 }
 0x1af   : > { %v702_v60 = vmul.f32 %v699_v26, %v694_v58  ;;  %v703_v61 = vmul.f32 %v699_v26, %v693_v57  ;;  %973 = vperm.xlu0 %1835, %v2568_v42   ;;  %v774_v57 = vpop.permute.xlu0 %773 }
 0x1b1   : > { %v706_v35 = vadd.f32 %v702_v60, %v681_v37  ;;  %v707_v1 = vadd.f32 %v703_v61, %v682_v40 }
 0x1b3   : > { %886 = vrot.lane.b32.xlu2 %v2557_v41, %s2017_s15  ;;  %884 = vrot.lane.b32.xlu1 %v2561_v4, %s2017_s15 }
 0x1b5   : > { %v741_v11 = vpop.permute.xlu2 %740  ;;  %v710_v8 = vpop.permute.xlu1 %709 }
 0x1b6   : > { %v720_v9 = vsel %vm717_vm2, %v710_v8, %v712_v32  ;;  %v721_v14 = vsel %vm717_vm2, %v716_v30, %v710_v8 }
 0x1b7   : > { %v726_v15 = vmul.f32 %v724_v10, %v720_v9  ;;  %v729_v16 = vmul.f32 %v724_v10, %v721_v14 }
 0x1b9   : > { %v730_v17 = vadd.f32 %v726_v15, %v705_v51  ;;  %v733_v18 = vadd.f32 %v729_v16, %v708_v52  ;;  %v2022_v52 = vmov 30  }
 0x1ba   : > { %1836 = vset.pattern.permute.xlu0 %v2022_v52 }
 0x1bb   : > { %890 = vrot.lane.b32.xlu2 %v2576_v53, %s2017_s15  ;;  %888 = vrot.lane.b32.xlu1 %v2580_v56, %s2017_s15  ;;  %s2045_s15 = smov 15  }
 0x1bc   : > { %998 = vperm.xlu0 %1836, %v2568_v42  }
 0x1bd   : > { %v762_v20 = vpop.permute.xlu2 %761  ;;  %v714_v24 = vpop.permute.xlu1 %713 }
 0x1be   : > { %v718_v19 = vsel %vm717_vm2, %v714_v24, %v716_v30  ;;  %v719_v23 = vsel %vm717_vm2, %v712_v32, %v714_v24  ;;  %vm1142_vm2 = vcmp.lt.s32.totalorder %v2267_v34, 17 }
 0x1bf   : > { %v727_v25 = vmul.f32 %v724_v10, %v719_v23  ;;  %v728_v27 = vmul.f32 %v724_v10, %v718_v19  ;;  %v799_v19 = vpop.permute.xlu0 %798 }
 0x1c1   : > { %v731_v5 = vadd.f32 %v727_v25, %v706_v35  ;;  %v732_v6 = vadd.f32 %v728_v27, %v707_v1 }
 0x1c3   : > { %911 = vrot.lane.b32.xlu2 %v2557_v41, %s2019_s29  ;;  %909 = vrot.lane.b32.xlu1 %v2561_v4, %s2019_s29 }
 0x1c5   : > { %v766_v33 = vpop.permute.xlu2 %765  ;;  %v735_v38 = vpop.permute.xlu1 %734 }
 0x1c6   : > { %v745_v32 = vsel %vm742_vm3, %v735_v38, %v737_v59  ;;  %v746_v39 = vsel %vm742_vm3, %v741_v11, %v735_v38 }
 0x1c7   : > { %v751_v36 = vmul.f32 %v749_v3, %v745_v32  ;;  %v754_v37 = vmul.f32 %v749_v3, %v746_v39 }
 0x1c9   : > { %v755_v40 = vadd.f32 %v751_v36, %v730_v17  ;;  %v758_v7 = vadd.f32 %v754_v37, %v733_v18  ;;  %v2024_v18 = vmov 31  }
 0x1ca   : > { %1837 = vset.pattern.permute.xlu0 %v2024_v18 }
 0x1cb   : > { %915 = vrot.lane.b32.xlu2 %v2576_v53, %s2019_s29  ;;  %913 = vrot.lane.b32.xlu1 %v2580_v56, %s2019_s29  ;;  %s2046_s29 = smov 12  }
 0x1cc   : > { %1023 = vperm.xlu0 %1837, %v2568_v42  }
 0x1cd   : > { %v787_v30 = vpop.permute.xlu2 %786  ;;  %v739_v26 = vpop.permute.xlu1 %738 }
 0x1ce   : > { %v743_v46 = vsel %vm742_vm3, %v739_v26, %v741_v11  ;;  %v744_v47 = vsel %vm742_vm3, %v737_v59, %v739_v26  ;;  %vm1117_vm3 = vcmp.lt.s32.totalorder %v2267_v34, 18 }
 0x1cf   : > { %v752_v48 = vmul.f32 %v749_v3, %v744_v47  ;;  %v753_v43 = vmul.f32 %v749_v3, %v743_v46  ;;  %v824_v46 = vpop.permute.xlu0 %823 }
 0x1d1   : > { %v756_v49 = vadd.f32 %v752_v48, %v731_v5  ;;  %v757_v51 = vadd.f32 %v753_v43, %v732_v6 }
 0x1d3   : > { %936 = vrot.lane.b32.xlu2 %v2557_v41, %s2021_s16  ;;  %934 = vrot.lane.b32.xlu1 %v2561_v4, %s2021_s16 }
 0x1d5   : > { %v791_v50 = vpop.permute.xlu2 %790  ;;  %v760_v58 = vpop.permute.xlu1 %759 }
 0x1d6   : > { %v770_v59 = vsel %vm767_vm4, %v760_v58, %v762_v20  ;;  %v771_v60 = vsel %vm767_vm4, %v766_v33, %v760_v58 }
 0x1d7   : > { %v776_v61 = vmul.f32 %v774_v57, %v770_v59  ;;  %v779_v35 = vmul.f32 %v774_v57, %v771_v60 }
 0x1d9   : > { %v780_v1 = vadd.f32 %v776_v61, %v755_v40  ;;  %v783_v2 = vadd.f32 %v779_v35, %v758_v7  ;;  %v2026_v7 = vmov 32  }
 0x1da   : > { %1838 = vset.pattern.permute.xlu0 %v2026_v7 }
 0x1db   : > { %940 = vrot.lane.b32.xlu2 %v2576_v53, %s2021_s16  ;;  %938 = vrot.lane.b32.xlu1 %v2580_v56, %s2021_s16  ;;  %s2047_s16 = smov 121  }
 0x1dc   : > { %1048 = vperm.xlu0 %1838, %v2568_v42  }
 0x1dd   : > { %v812_v11 = vpop.permute.xlu2 %811  ;;  %v764_v10 = vpop.permute.xlu1 %763 }
 0x1de   : > { %v768_v8 = vsel %vm767_vm4, %v764_v10, %v766_v33  ;;  %v769_v9 = vsel %vm767_vm4, %v762_v20, %v764_v10  ;;  %vm1167_vm4 = vcmp.lt.s32.totalorder %v2267_v34, 16 }
 0x1df   : > { %v777_v14 = vmul.f32 %v774_v57, %v769_v9  ;;  %v778_v15 = vmul.f32 %v774_v57, %v768_v8  ;;  %v849_v8 = vpop.permute.xlu0 %848 }
 0x1e1   : > { %v781_v16 = vadd.f32 %v777_v14, %v756_v49  ;;  %v782_v17 = vadd.f32 %v778_v15, %v757_v51 }
 0x1e3   : > { %961 = vrot.lane.b32.xlu2 %v2557_v41, %s2023_s17  ;;  %959 = vrot.lane.b32.xlu1 %v2561_v4, %s2023_s17 }
 0x1e5   : > { %v816_v24 = vpop.permute.xlu2 %815  ;;  %v785_v23 = vpop.permute.xlu1 %784 }
 0x1e6   : > { %v795_v20 = vsel %vm792_vm5, %v785_v23, %v787_v30  ;;  %v796_v25 = vsel %vm792_vm5, %v791_v50, %v785_v23 }
 0x1e7   : > { %v801_v27 = vmul.f32 %v799_v19, %v795_v20  ;;  %v804_v5 = vmul.f32 %v799_v19, %v796_v25 }
 0x1e9   : > { %v805_v6 = vadd.f32 %v801_v27, %v780_v1  ;;  %v808_v31 = vadd.f32 %v804_v5, %v783_v2  ;;  %v2028_v2 = vmov 33  }
 0x1ea   : > { %1839 = vset.pattern.permute.xlu0 %v2028_v2 }
 0x1eb   : > { %965 = vrot.lane.b32.xlu2 %v2576_v53, %s2023_s17  ;;  %963 = vrot.lane.b32.xlu1 %v2580_v56, %s2023_s17  ;;  %s2048_s17 = smov 120  }
 0x1ec   : > { %1073 = vperm.xlu0 %1839, %v2568_v42  }
 0x1ed   : > { %v837_v33 = vpop.permute.xlu2 %836  ;;  %v789_v3 = vpop.permute.xlu1 %788 }
 0x1ee   : > { %v793_v38 = vsel %vm792_vm5, %v789_v3, %v791_v50  ;;  %v794_v32 = vsel %vm792_vm5, %v787_v30, %v789_v3  ;;  %vm1192_vm5 = vcmp.lt.s32.totalorder %v2267_v34, 15 }
 0x1ef   : > { %v802_v39 = vmul.f32 %v799_v19, %v794_v32  ;;  %v803_v36 = vmul.f32 %v799_v19, %v793_v38  ;;  %v874_v38 = vpop.permute.xlu0 %873  ;;  %v2031_v32 = vmov 35  }
 0x1f1   : > { %v806_v37 = vadd.f32 %v802_v39, %v781_v16  ;;  %v807_v40 = vadd.f32 %v803_v36, %v782_v17 }
 0x1f3   : > { %986 = vrot.lane.b32.xlu2 %v2557_v41, %s2025_s23  ;;  %984 = vrot.lane.b32.xlu1 %v2561_v4, %s2025_s23 }
 0x1f5   : > { %v841_v26 = vpop.permute.xlu2 %840  ;;  %v810_v47 = vpop.permute.xlu1 %809 }
 0x1f6   : > { %v820_v30 = vsel %vm817_vm6, %v810_v47, %v812_v11  ;;  %v821_v48 = vsel %vm817_vm6, %v816_v24, %v810_v47 }
 0x1f7   : > { %v826_v43 = vmul.f32 %v824_v46, %v820_v30  ;;  %v829_v49 = vmul.f32 %v824_v46, %v821_v48 }
 0x1f9   : > { %v830_v51 = vadd.f32 %v826_v43, %v805_v6  ;;  %v833_v52 = vadd.f32 %v829_v49, %v808_v31 }
 0x1fb   : > { %990 = vrot.lane.b32.xlu2 %v2576_v53, %s2025_s23  ;;  %988 = vrot.lane.b32.xlu1 %v2580_v56, %s2025_s23  ;;  %s2052_s23 = smov 118  }
 0x1fd   : > { %v862_v50 = vpop.permute.xlu2 %861  ;;  %v814_v57 = vpop.permute.xlu1 %813 }
 0x1fe   : > { %v818_v58 = vsel %vm817_vm6, %v814_v57, %v816_v24  ;;  %v819_v59 = vsel %vm817_vm6, %v812_v11, %v814_v57  ;;  %v2029_v24 = vmov 34   ;;  %vm1217_vm6 = vcmp.lt.s32.totalorder %v2267_v34, 14 }
 0x1ff   : > { %v827_v60 = vmul.f32 %v824_v46, %v819_v59  ;;  %v828_v61 = vmul.f32 %v824_v46, %v818_v58  ;;  %1840 = vset.pattern.permute.xlu0 %v2029_v24  ;;  %v899_v58 = vpop.permute.xlu0 %898  ;;  %v2034_v59 = vmov 37  }
 0x200   : > { %1098 = vperm.xlu0 %1840, %v2568_v42  }
 0x201   : > { %v831_v35 = vadd.f32 %v827_v60, %v806_v37  ;;  %v832_v1 = vadd.f32 %v828_v61, %v807_v40 }
 0x203   : > { %1011 = vrot.lane.b32.xlu2 %v2557_v41, %s2027_s25  ;;  %1009 = vrot.lane.b32.xlu1 %v2561_v4, %s2027_s25 }
 0x205   : > { %v866_v10 = vpop.permute.xlu2 %865  ;;  %v835_v9 = vpop.permute.xlu1 %834 }
 0x206   : > { %v845_v11 = vsel %vm842_vm7, %v835_v9, %v837_v33  ;;  %v846_v14 = vsel %vm842_vm7, %v841_v26, %v835_v9 }
 0x207   : > { %v851_v15 = vmul.f32 %v849_v8, %v845_v11  ;;  %v854_v16 = vmul.f32 %v849_v8, %v846_v14 }
 0x208   : > { %1841 = vset.pattern.permute.xlu0 %v2031_v32 }
 0x209   : > { %v855_v17 = vadd.f32 %v851_v15, %v830_v51  ;;  %v858_v18 = vadd.f32 %v854_v16, %v833_v52  ;;  %1123 = vperm.xlu0 %1841, %v2568_v42  }
 0x20b   : > { %1015 = vrot.lane.b32.xlu2 %v2576_v53, %s2027_s25  ;;  %1013 = vrot.lane.b32.xlu1 %v2580_v56, %s2027_s25  ;;  %s2053_s25 = smov 119  }
 0x20d   : > { %v887_v19 = vpop.permute.xlu2 %886  ;;  %v839_v23 = vpop.permute.xlu1 %838 }
 0x20e   : > { %v843_v20 = vsel %vm842_vm7, %v839_v23, %v841_v26  ;;  %v844_v25 = vsel %vm842_vm7, %v837_v33, %v839_v23  ;;  %vm1242_vm7 = vcmp.lt.s32.totalorder %v2267_v34, 13 }
 0x20f   : > { %v852_v27 = vmul.f32 %v849_v8, %v844_v25  ;;  %v853_v5 = vmul.f32 %v849_v8, %v843_v20  ;;  %v924_v23 = vpop.permute.xlu0 %923 }
 0x211   : > { %v856_v6 = vadd.f32 %v852_v27, %v831_v35  ;;  %v857_v31 = vadd.f32 %v853_v5, %v832_v1  ;;  %1159 = vrot.lane.b32.xlu0 %v2561_v4, %s2032_s8 }
 0x212   : > { %1843 = vset.pattern.permute.xlu0 %v2034_v59 }
 0x213   : > { %1036 = vrot.lane.b32.xlu2 %v2557_v41, %s2030_s26  ;;  %1034 = vrot.lane.b32.xlu1 %v2561_v4, %s2030_s26 }
 0x215   : > { %v891_v3 = vpop.permute.xlu2 %890  ;;  %v860_v39 = vpop.permute.xlu1 %859 }
 0x216   : > { %v870_v33 = vsel %vm867_vm8, %v860_v39, %v862_v50  ;;  %v871_v36 = vsel %vm867_vm8, %v866_v10, %v860_v39 }
 0x217   : > { %v876_v37 = vmul.f32 %v874_v38, %v870_v33  ;;  %v879_v40 = vmul.f32 %v874_v38, %v871_v36 }
 0x219   : > { %v880_v7 = vadd.f32 %v876_v37, %v855_v17  ;;  %v883_v26 = vadd.f32 %v879_v40, %v858_v18  ;;  %1173 = vperm.xlu0 %1843, %v2568_v42  }
 0x21b   : > { %1040 = vrot.lane.b32.xlu2 %v2576_v53, %s2030_s26  ;;  %1038 = vrot.lane.b32.xlu1 %v2580_v56, %s2030_s26 }
 0x21d   : > { %v2682_v46 = vpop.permute.xlu2 %911  ;;  %v864_v47 = vpop.permute.xlu1 %863 }
 0x21e   : > { %v868_v30 = vsel %vm867_vm8, %v864_v47, %v866_v10  ;;  %v869_v48 = vsel %vm867_vm8, %v862_v50, %v864_v47  ;;  %v949_v47 = vpop.permute.xlu0 %948  ;;  %vm1267_vm8 = vcmp.lt.s32.totalorder %v2267_v34, 12 }
 0x21f   : > { %v877_v43 = vmul.f32 %v874_v38, %v869_v48  ;;  %v878_v49 = vmul.f32 %v874_v38, %v868_v30 }
 0x221   : > { %v881_v51 = vadd.f32 %v877_v43, %v856_v6  ;;  %v882_v52 = vadd.f32 %v878_v49, %v857_v31  ;;  %1136 = vrot.lane.b32.xlu0 %v2557_v41, %s2035_s9 }
 0x223   : > { %1061 = vrot.lane.b32.xlu2 %v2557_v41, %s2033_s28  ;;  %1059 = vrot.lane.b32.xlu1 %v2561_v4, %s2033_s28 }
 0x225   : > { %v916_v57 = vpop.permute.xlu2 %915  ;;  %v885_v60 = vpop.permute.xlu1 %884 }
 0x226   : > { %v895_v50 = vsel %vm892_vm9, %v885_v60, %v887_v19  ;;  %v896_v61 = vsel %vm892_vm9, %v891_v3, %v885_v60 }
 0x227   : > { %v901_v35 = vmul.f32 %v899_v58, %v895_v50  ;;  %v904_v1 = vmul.f32 %v899_v58, %v896_v61 }
 0x229   : > { %v905_v2 = vadd.f32 %v901_v35, %v880_v7  ;;  %v908_v10 = vadd.f32 %v904_v1, %v883_v26  ;;  %1215 = vrot.lane.b32.xlu0 %v2576_v53, %s2037_s11 }
 0x22b   : > { %1065 = vrot.lane.b32.xlu2 %v2576_v53, %s2033_s28  ;;  %1063 = vrot.lane.b32.xlu1 %v2580_v56, %s2033_s28 }
 0x22d   : > { %v937_v8 = vpop.permute.xlu2 %936  ;;  %v889_v9 = vpop.permute.xlu1 %888 }
 0x22e   : > { %v893_v11 = vsel %vm892_vm9, %v889_v9, %v891_v3  ;;  %v894_v14 = vsel %vm892_vm9, %v887_v19, %v889_v9  ;;  %v2038_v3 = vmov 36   ;;  %vm1328_vm9 = vcmp.lt.s32.totalorder %v2267_v34, 121 }
 0x22f   : > { %v902_v15 = vmul.f32 %v899_v58, %v894_v14  ;;  %v903_v16 = vmul.f32 %v899_v58, %v893_v11  ;;  %1842 = vset.pattern.permute.xlu2 %v2038_v3  ;;  %v2042_v3 = vmov 39  }
 0x230   : > { %1845 = vset.pattern.permute.xlu1 %v2042_v3 }
 0x231   : > { %v906_v17 = vadd.f32 %v902_v15, %v881_v51  ;;  %v907_v18 = vadd.f32 %v903_v16, %v882_v52  ;;  %1234 = vrot.lane.b32.xlu0 %v2561_v4, %s2039_s12 }
 0x233   : > { %1086 = vrot.lane.b32.xlu2 %v2557_v41, %s2036_s10  ;;  %1084 = vrot.lane.b32.xlu1 %v2561_v4, %s2036_s10 }
 0x235   : > { %v941_v24 = vpop.permute.xlu2 %940  ;;  %v910_v20 = vpop.permute.xlu1 %909 }
 0x236   : > { %v920_v19 = vsel %vm917_vm10, %v910_v20, %v2682_v46  ;;  %v921_v25 = vsel %vm917_vm10, %v916_v57, %v910_v20 }
 0x237   : > { %v926_v27 = vmul.f32 %v924_v23, %v920_v19  ;;  %v929_v5 = vmul.f32 %v924_v23, %v921_v25 }
 0x239   : > { %v930_v6 = vadd.f32 %v926_v27, %v905_v2  ;;  %v933_v31 = vadd.f32 %v929_v5, %v908_v10  ;;  %v974_v10 = vpop.permute.xlu0 %973 }
 0x23b   : > { %1090 = vrot.lane.b32.xlu2 %v2576_v53, %s2036_s10  ;;  %1088 = vrot.lane.b32.xlu1 %v2580_v56, %s2036_s10 }
 0x23d   : > { %v962_v38 = vpop.permute.xlu2 %961  ;;  %v914_v32 = vpop.permute.xlu1 %913 }
 0x23e   : > { %v918_v39 = vsel %vm917_vm10, %v914_v32, %v916_v57  ;;  %v919_v33 = vsel %vm917_vm10, %v2682_v46, %v914_v32  ;;  %v2043_v32 = vmov 38   ;;  %vm1353_vm10 = vcmp.lt.s32.totalorder %v2267_v34, 120 }
 0x23f   : > { %v927_v36 = vmul.f32 %v924_v23, %v919_v33  ;;  %v928_v37 = vmul.f32 %v924_v23, %v918_v39  ;;  %v2041_v23 = vmov 40  }
 0x240   : > { %1846 = vset.pattern.permute.xlu0 %v2041_v23 }
 0x241   : > { %v931_v40 = vadd.f32 %v927_v36, %v906_v17  ;;  %v932_v7 = vadd.f32 %v928_v37, %v907_v18  ;;  %1248 = vperm.xlu0 %1846, %v2568_v42   ;;  %v999_v5 = vpop.permute.xlu0 %998  ;;  %v2044_v37 = vmov 41  }
 0x243   : > { %1111 = vrot.lane.b32.xlu2 %v2557_v41, %s2040_s13  ;;  %1109 = vrot.lane.b32.xlu1 %v2561_v4, %s2040_s13 }
 0x245   : > { %v966_v26 = vpop.permute.xlu2 %965  ;;  %v935_v30 = vpop.permute.xlu1 %934 }
 0x246   : > { %v945_v48 = vsel %vm942_vm11, %v935_v30, %v937_v8  ;;  %v946_v43 = vsel %vm942_vm11, %v941_v24, %v935_v30 }
 0x247   : > { %v951_v49 = vmul.f32 %v949_v47, %v945_v48  ;;  %v954_v51 = vmul.f32 %v949_v47, %v946_v43 }
 0x249   : > { %v955_v52 = vadd.f32 %v951_v49, %v930_v6  ;;  %v958_v46 = vadd.f32 %v954_v51, %v933_v31  ;;  %1847 = vset.pattern.permute.xlu0 %v2044_v37 }
 0x24a   : > { %1273 = vperm.xlu0 %1847, %v2568_v42  }
 0x24b   : > { %1115 = vrot.lane.b32.xlu2 %v2576_v53, %s2040_s13  ;;  %1113 = vrot.lane.b32.xlu1 %v2580_v56, %s2040_s13 }
 0x24d   : > { %v987_v57 = vpop.permute.xlu2 %986  ;;  %v939_v58 = vpop.permute.xlu1 %938 }
 0x24e   : > { %v943_v59 = vsel %vm942_vm11, %v939_v58, %v941_v24  ;;  %v944_v60 = vsel %vm942_vm11, %v937_v8, %v939_v58  ;;  %vm1378_vm11 = vcmp.lt.s32.totalorder %v2267_v34, 119 }
 0x24f   : > { %v952_v50 = vmul.f32 %v949_v47, %v944_v60  ;;  %v953_v61 = vmul.f32 %v949_v47, %v943_v59 }
 0x251   : > { %v956_v35 = vadd.f32 %v952_v50, %v931_v40  ;;  %v957_v1 = vadd.f32 %v953_v61, %v932_v7 }
 0x252   : > { %1261 = vrot.lane.b32.xlu0 %v2557_v41, %s2046_s29 }
 0x253   : > { %1138 = vrot.lane.b32.xlu2 %v2580_v56, %s2035_s9  ;;  %1134 = vrot.lane.b32.xlu1 %v2561_v4, %s2035_s9 }
 0x255   : > { %v991_v2 = vpop.permute.xlu2 %990  ;;  %v960_v9 = vpop.permute.xlu1 %959 }
 0x256   : > { %v970_v11 = vsel %vm967_vm12, %v960_v9, %v962_v38  ;;  %v971_v8 = vsel %vm967_vm12, %v966_v26, %v960_v9 }
 0x257   : > { %v976_v14 = vmul.f32 %v974_v10, %v970_v11  ;;  %v979_v15 = vmul.f32 %v974_v10, %v971_v8 }
 0x259   : > { %v980_v16 = vadd.f32 %v976_v14, %v955_v52  ;;  %v983_v17 = vadd.f32 %v979_v15, %v958_v46 }
 0x25a   : > { %1322 = vrot.lane.b32.xlu0 %v2557_v41, %s2047_s16 }
 0x25b   : > { %1148 = vperm.xlu2 %1842, %v2568_v42   ;;  %1140 = vrot.lane.b32.xlu1 %v2576_v53, %s2035_s9 }
 0x25d   : > { %v2742_v18 = vpop.permute.xlu2 %1011  ;;  %v964_v24 = vpop.permute.xlu1 %963 }
 0x25e   : > { %v968_v20 = vsel %vm967_vm12, %v964_v24, %v966_v26  ;;  %v969_v19 = vsel %vm967_vm12, %v962_v38, %v964_v24  ;;  %v1024_v26 = vpop.permute.xlu0 %1023  ;;  %vm1403_vm12 = vcmp.lt.s32.totalorder %v2267_v34, 118 }
 0x25f   : > { %v977_v25 = vmul.f32 %v974_v10, %v969_v19  ;;  %v978_v27 = vmul.f32 %v974_v10, %v968_v20 }
 0x261   : > { %v981_v6 = vadd.f32 %v977_v25, %v956_v35  ;;  %v982_v31 = vadd.f32 %v978_v27, %v957_v1  ;;  %v2049_v25 = vmov 42  }
 0x262   : > { %1345 = vrot.lane.b32.xlu0 %v2561_v4, %s2048_s17 }
 0x263   : > { %1165 = vrot.lane.b32.xlu2 %v2576_v53, %s2032_s8  ;;  %1163 = vrot.lane.b32.xlu1 %v2580_v56, %s2032_s8 }
 0x264   : > { %1844 = vset.pattern.permute.xlu2 %v2043_v32 }
 0x265   : > { %v1016_v38 = vpop.permute.xlu2 %1015  ;;  %v985_v39 = vpop.permute.xlu1 %984 }
 0x266   : > { %v995_v33 = vsel %vm992_vm13, %v985_v39, %v987_v57  ;;  %v996_v36 = vsel %vm992_vm13, %v991_v2, %v985_v39  ;;  %v1049_v58 = vpop.permute.xlu0 %1048 }
 0x267   : > { %v1001_v40 = vmul.f32 %v999_v5, %v995_v33  ;;  %v1004_v7 = vmul.f32 %v999_v5, %v996_v36  ;;  %v2050_v36 = vmov 46  }
 0x268   : > { %1852 = vset.pattern.permute.xlu0 %v2050_v36 }
 0x269   : > { %v1005_v47 = vadd.f32 %v1001_v40, %v980_v16  ;;  %v1008_v30 = vadd.f32 %v1004_v7, %v983_v17 }
 0x26a   : > { %1359 = vperm.xlu0 %1852, %v2568_v42  }
 0x26b   : > { %1188 = vrot.lane.b32.xlu2 %v2580_v56, %s2045_s15  ;;  %1184 = vrot.lane.b32.xlu1 %v2561_v4, %s2045_s15 }
 0x26d   : > { %v1037_v48 = vpop.permute.xlu2 %1036  ;;  %v989_v43 = vpop.permute.xlu1 %988 }
 0x26e   : > { %v993_v49 = vsel %vm992_vm13, %v989_v43, %v991_v2  ;;  %v994_v51 = vsel %vm992_vm13, %v987_v57, %v989_v43  ;;  %v2780_v10 = vpop.permute.xlu0 %1073  ;;  %vm1444_vm13 = vcmask 64512  }
 0x26f   : > { %v1002_v52 = vmul.f32 %v999_v5, %v994_v51  ;;  %v1003_v46 = vmul.f32 %v999_v5, %v993_v49  ;;  %v2051_v49 = vmov 44  }
 0x271   : > { %v1006_v59 = vadd.f32 %v1002_v52, %v981_v6  ;;  %v1007_v60 = vadd.f32 %v1003_v46, %v982_v31 }
 0x272   : > { %1324 = vrot.lane.b32.xlu0 %v2580_v56, %s2047_s16 }
 0x273   : > { %1198 = vperm.xlu2 %1844, %v2568_v42   ;;  %1190 = vrot.lane.b32.xlu1 %v2576_v53, %s2045_s15 }
 0x274   : > { %1856 = vset.pattern.permute.xlu0 %v1964_v0 }
 0x275   : > { %v1041_v50 = vpop.permute.xlu2 %1040  ;;  %v1010_v61 = vpop.permute.xlu1 %1009 }
 0x276   : > { %v1020_v57 = vsel %vm1017_vm14, %v1010_v61, %v2742_v18  ;;  %v1021_v35 = vsel %vm1017_vm14, %v1016_v38, %v1010_v61  ;;  %v2795_v19 = vpop.permute.xlu0 %1098 }
 0x277   : > { %v1026_v1 = vmul.f32 %v1024_v26, %v1020_v57  ;;  %v1029_v2 = vmul.f32 %v1024_v26, %v1021_v35 }
 0x279   : > { %v1030_v9 = vadd.f32 %v1026_v1, %v1005_v47  ;;  %v1033_v11 = vadd.f32 %v1029_v2, %v1008_v30 }
 0x27a   : > { %1401 = vrot.lane.b32.xlu0 %v2576_v53, %s2052_s23 }
 0x27b   : > { %1213 = vrot.lane.b32.xlu2 %v2580_v56, %s2037_s11  ;;  %1209 = vrot.lane.b32.xlu1 %v2561_v4, %s2037_s11 }
 0x27c   : > { %1848 = vset.pattern.permute.xlu2 %v2049_v25 }
 0x27d   : > { %v1062_v8 = vpop.permute.xlu2 %1061  ;;  %v1014_v14 = vpop.permute.xlu1 %1013 }
 0x27e   : > { %v1018_v15 = vsel %vm1017_vm14, %v1014_v14, %v1016_v38  ;;  %v1019_v16 = vsel %vm1017_vm14, %v2742_v18, %v1014_v14  ;;  %v2809_v33 = vpop.permute.xlu0 %1123 }
 0x27f   : > { %v1027_v17 = vmul.f32 %v1024_v26, %v1019_v16  ;;  %v1028_v24 = vmul.f32 %v1024_v26, %v1018_v15 }
 0x281   : > { %v1031_v23 = vadd.f32 %v1027_v17, %v1006_v59  ;;  %v1032_v20 = vadd.f32 %v1028_v24, %v1007_v60 }
 0x282   : > { %1374 = vrot.lane.b32.xlu0 %v2580_v56, %s2053_s25 }
 0x283   : > { %1161 = vrot.lane.b32.xlu2 %v2557_v41, %s2032_s8  ;;  %1223 = vperm.xlu1 %1845, %v2568_v42  }
 0x285   : > { %v1066_v18 = vpop.permute.xlu2 %1065  ;;  %v1035_v27 = vpop.permute.xlu1 %1034 }
 0x286   : > { %v1045_v5 = vsel %vm1042_vm15, %v1035_v27, %v1037_v48  ;;  %v1046_v6 = vsel %vm1042_vm15, %v1041_v50, %v1035_v27  ;;  %v2054_v27 = vmov 43  }
 0x287   : > { %v1051_v31 = vmul.f32 %v1049_v58, %v1045_v5  ;;  %v1054_v3 = vmul.f32 %v1049_v58, %v1046_v6 }
 0x289   : > { %v1055_v32 = vadd.f32 %v1051_v31, %v1030_v9  ;;  %v1058_v38 = vadd.f32 %v1054_v3, %v1033_v11 }
 0x28b   : > { %1240 = vrot.lane.b32.xlu2 %v2576_v53, %s2039_s12  ;;  %1238 = vrot.lane.b32.xlu1 %v2580_v56, %s2039_s12 }
 0x28c   : > { %1850 = vset.pattern.permute.xlu1 %v2051_v49 }
 0x28d   : > { %v2807_v39 = vpop.permute.xlu2 %1086  ;;  %v1039_v37 = vpop.permute.xlu1 %1038 }
 0x28e   : > { %v1043_v40 = vsel %vm1042_vm15, %v1039_v37, %v1041_v50  ;;  %v1044_v7 = vsel %vm1042_vm15, %v1037_v48, %v1039_v37 }
 0x28f   : > { %v1052_v26 = vmul.f32 %v1049_v58, %v1044_v7  ;;  %v1053_v47 = vmul.f32 %v1049_v58, %v1043_v40  ;;  %v2827_v58 = vpop.permute.xlu0 %1159 }
 0x291   : > { %v1056_v30 = vadd.f32 %v1052_v26, %v1031_v23  ;;  %v1057_v43 = vadd.f32 %v1053_v47, %v1032_v20  ;;  %v2055_v26 = vmov 45  }
 0x293   : > { %1259 = vrot.lane.b32.xlu2 %v2561_v4, %s2046_s29  ;;  %1186 = vrot.lane.b32.xlu1 %v2557_v41, %s2045_s15  ;;  %s1916_s15 = scalar_lea.hbm %s3107_s5, 128 }
 0x295   : > { %v1091_v51 = vpop.permute.xlu2 %1090  ;;  %v1060_v52 = vpop.permute.xlu1 %1059 }
 0x296   : > { %v1070_v48 = vsel %vm1067_vm0, %v1060_v52, %v1062_v8  ;;  %v1071_v46 = vsel %vm1067_vm0, %v1066_v18, %v1060_v52 }
 0x297   : > { %v1076_v59 = vmul.f32 %v2780_v10, %v1070_v48  ;;  %v1079_v60 = vmul.f32 %v2780_v10, %v1071_v46  ;;  %v2844_v14 = vpop.permute.xlu0 %1173 }
 0x299   : > { %v1080_v50 = vadd.f32 %v1076_v59, %v1055_v32  ;;  %v1083_v61 = vadd.f32 %v1079_v60, %v1058_v38 }
 0x29b   : > { %1265 = vrot.lane.b32.xlu2 %v2576_v53, %s2046_s29  ;;  %1263 = vrot.lane.b32.xlu1 %v2580_v56, %s2046_s29 }
 0x29d   : > { %v1112_v57 = vpop.permute.xlu2 %1111  ;;  %v1064_v35 = vpop.permute.xlu1 %1063 }
 0x29e   : > { %v1068_v1 = vsel %vm1067_vm0, %v1064_v35, %v1066_v18  ;;  %v1069_v2 = vsel %vm1067_vm0, %v1062_v8, %v1064_v35 }
 0x29f   : > { %v1077_v9 = vmul.f32 %v2780_v10, %v1069_v2  ;;  %v1078_v11 = vmul.f32 %v2780_v10, %v1068_v1  ;;  %v1137_v5 = vpop.permute.xlu0 %1136 }
 0x2a1   : > { %v1081_v15 = vadd.f32 %v1077_v9, %v1056_v30  ;;  %v1082_v16 = vadd.f32 %v1078_v11, %v1057_v43  ;;  %v2056_v11 = vmov 48  }
 0x2a3   : > { %1285 = vperm.xlu2 %1848, %v2568_v42   ;;  %1211 = vrot.lane.b32.xlu1 %v2557_v41, %s2037_s11 }
 0x2a5   : > { %v1116_v17 = vpop.permute.xlu2 %1115  ;;  %v1085_v24 = vpop.permute.xlu1 %1084 }
 0x2a6   : > { %v1095_v10 = vsel %vm1092_vm1, %v1085_v24, %v2807_v39  ;;  %v1096_v8 = vsel %vm1092_vm1, %v1091_v51, %v1085_v24 }
 0x2a7   : > { %v1101_v23 = vmul.f32 %v2795_v19, %v1095_v10  ;;  %v1104_v20 = vmul.f32 %v2795_v19, %v1096_v8 }
 0x2a9   : > { %v1105_v25 = vadd.f32 %v1101_v23, %v1080_v50  ;;  %v1108_v18 = vadd.f32 %v1104_v20, %v1083_v61 }
 0x2ab   : > { %1849 = vset.pattern.permute.xlu2 %v2054_v27  ;;  %1236 = vrot.lane.b32.xlu1 %v2557_v41, %s2039_s12 }
 0x2ac   : > { %1297 = vperm.xlu2 %1849, %v2568_v42  }
 0x2ad   : > { %v1139_v56 = vpop.permute.xlu2 %1138  ;;  %v1089_v6 = vpop.permute.xlu1 %1088 }
 0x2ae   : > { %v1144_v31 = vsel %vm1142_vm2, %v1137_v5, %v1139_v56  ;;  %v1093_v3 = vsel %vm1092_vm1, %v1089_v6, %v1091_v51  ;;  %v1094_v32 = vsel %vm1092_vm1, %v2807_v39, %v1089_v6 }
 0x2af   : > { %v1102_v38 = vmul.f32 %v2795_v19, %v1094_v32  ;;  %v1103_v36 = vmul.f32 %v2795_v19, %v1093_v3  ;;  %v1216_v32 = vpop.permute.xlu0 %1215 }
 0x2b1   : > { %v1106_v37 = vadd.f32 %v1102_v38, %v1081_v15  ;;  %v1107_v40 = vadd.f32 %v1103_v36, %v1082_v16  ;;  %v1862_v36 = vld [vmem:[%s2180_s14] sm:$0xff] }
 0x2b3   : > { %1309 = vperm.xlu1 %1850, %v2568_v42  }
 0x2b4   : > { %1320 = vrot.lane.b32.xlu2 %v2561_v4, %s2047_s16 }
 0x2b5   : > { %v1149_v7 = vpop.permute.xlu2 %1148  ;;  %1851 = vset.pattern.permute.xlu2 %v2055_v26  ;;  %v1110_v47 = vpop.permute.xlu1 %1109 }
 0x2b6   : > { %v1152_v30 = vmul.f32 %v1149_v7, %v1144_v31  ;;  %v1120_v39 = vsel %vm1117_vm3, %v1110_v47, %v1112_v57  ;;  %v1121_v19 = vsel %vm1117_vm3, %v1116_v17, %v1110_v47 }
 0x2b7   : > { %v1126_v43 = vmul.f32 %v2809_v33, %v1120_v39  ;;  %v1129_v49 = vmul.f32 %v2809_v33, %v1121_v19  ;;  %v2933_v19 = vpop.permute.xlu0 %1234 }
 0x2b9   : > { %v1130_v51 = vadd.f32 %v1126_v43, %v1105_v25  ;;  %v1133_v52 = vadd.f32 %v1129_v49, %v1108_v18  ;;  %v1864_v43 = vld [vmem:[%s3103_s1] sm:$0xff]  ;;  %v1865_v49 = vld [vmem:[%s2180_s14 + $0x10] sm:$0xff] }
 0x2bb   : > { %1326 = vrot.lane.b32.xlu1 %v2576_v53, %s2047_s16 }
 0x2bc   : > { %1334 = vperm.xlu2 %1851, %v2568_v42   ;;  %1854 = vset.pattern.permute.xlu1 %v2056_v11 }
 0x2bd   : > { %v1166_v48 = vpop.permute.xlu2 %1165  ;;  %v1114_v46 = vpop.permute.xlu1 %1113 }
 0x2be   : > { %v1171_v59 = vsel %vm1167_vm4, %v1166_v48, %v2827_v58  ;;  %v1118_v60 = vsel %vm1117_vm3, %v1114_v46, %v1116_v17  ;;  %v1119_v50 = vsel %vm1117_vm3, %v1112_v57, %v1114_v46  ;;  %v2057_v57 = vmov 47  }
 0x2bf   : > { %v1179_v61 = vmul.f32 %v2844_v14, %v1171_v59  ;;  %v1127_v35 = vmul.f32 %v2809_v33, %v1119_v50  ;;  %v1128_v1 = vmul.f32 %v2809_v33, %v1118_v60  ;;  %v1420_v50 = vld [vmem:[%s3104_s2] sm:$0xff] }
 0x2c1   : > { %v1131_v2 = vadd.f32 %v1127_v35, %v1106_v37  ;;  %v1132_v9 = vadd.f32 %v1128_v1, %v1107_v40  ;;  %v1863_v37 = vld [vmem:[%s2180_s14 + $0x8] sm:$0xff] }
 0x2c3   : > { %v1156_v15 = vadd.f32 %v1152_v30, %v1131_v2  ;;  %1347 = vrot.lane.b32.xlu1 %v2557_v41, %s2048_s17 }
 0x2c4   : > { %1351 = vrot.lane.b32.xlu2 %v2576_v53, %s2048_s17 }
 0x2c5   : > { %v2900_v16 = vpop.permute.xlu2 %1188  ;;  %1853 = vset.pattern.permute.xlu2 %v2057_v57  ;;  %v1135_v17 = vpop.permute.xlu1 %1134 }
 0x2c6   : > { %v1145_v24 = vsel %vm1142_vm2, %v1135_v17, %v1137_v5 }
 0x2c7   : > { %v1151_v33 = vmul.f32 %v1149_v7, %v1145_v24 }
 0x2c9   : > { %v1155_v10 = vadd.f32 %v1151_v33, %v1130_v51 }
 0x2cb   : > { %1370 = vrot.lane.b32.xlu1 %v2561_v4, %s2053_s25 }
 0x2cc   : > { %1372 = vrot.lane.b32.xlu2 %v2557_v41, %s2053_s25 }
 0x2cd   : > { %v2908_v8 = vpop.permute.xlu2 %1198  ;;  %v1141_v23 = vpop.permute.xlu1 %1140 }
 0x2ce   : > { %v1143_v20 = vsel %vm1142_vm2, %v1139_v56, %v1141_v23  ;;  %v1146_v25 = vsel %vm1142_vm2, %v1141_v23, %v1135_v17 }
 0x2cf   : > { %v1153_v18 = vmul.f32 %v1149_v7, %v1143_v20  ;;  %v1154_v27 = vmul.f32 %v1149_v7, %v1146_v25 }
 0x2d1   : > { %v1157_v5 = vadd.f32 %v1153_v18, %v1132_v9  ;;  %v1158_v6 = vadd.f32 %v1154_v27, %v1133_v52  ;;  %v1433_v9 = vld [vmem:[%s3106_s4 + $0x8] sm:$0xff] }
 0x2d3   : > { %1376 = vrot.lane.b32.xlu1 %v2576_v53, %s2053_s25  ;;  %v1183_v41 = vadd.f32 %v1179_v61, %v1158_v6  ;;  %v1249_v61 = vpop.permute.xlu0 %1248  ;;  %s1663_s25 = sshll.u32 %s2111_s22, 6  ;;  %s1552_s22 = scalar_lea.sflag [#allocation4], %s2176_s7 }
 0x2d4   : > { %1384 = vperm.xlu2 %1853, %v2568_v42   ;;  %s1563_s14 = scalar_lea.hbm %s3107_s5, %s1663_s25 }
 0x2d5   : > { %v2917_v4 = vpop.permute.xlu2 %1213  ;;  %v1164_v31 = vpop.permute.xlu1 %1163  ;;  %s1566_s9 = sshll.u32 %s1563_s14, 4  ;;  %s1567_s9 = int_to_ptr.hbm [resolvable:$true] %s1566_s9 }
 0x2d6   : > { %v1168_v56 = vsel %vm1167_vm4, %v1164_v31, %v1166_v48  ;;  %s1910_s10 = sshra.s32 %s1567_s9, 4  ;;  %s1911_s10 = int_to_ptr.hbm [resolvable:$true] %s1910_s10 }
 0x2d7   : > { %v1178_v3 = vmul.f32 %v2844_v14, %v1168_v56  ;;  %s1912_s11 = scalar_lea.hbm %s1911_s10, 64  ;;  %p1917_p0 = scmp.lt.s32.totalorder %s1911_s10, %s3107_s5 }
 0x2d8   : > { %p1913_p6 = scmp.ne.s32.totalorder %s1911_s10, %s1912_s11  ;;  %p1918_p1 = scmp.lt.s32.totalorder %s1916_s15, %s1912_s11 }
 0x2d9   : > { %v1182_v38 = vadd.f32 %v1178_v3, %v1157_v5 }
 0x2da   : > { %p1914_p9 = pnand %p1913_p6, %p2140_p11  ;;  %p1919_p3 = por %p1918_p1, %p1917_p0 }
 0x2db   : > { %1395 = vrot.lane.b32.xlu1 %v1862_v36, %s2052_s23  ;;  %v1274_v24 = vpop.permute.xlu0 %1273 }
 0x2dc   : > { %1397 = vrot.lane.b32.xlu2 %v1863_v37, %s2052_s23  ;;  %p1915_p13 = pneg %p1914_p9 }
 0x2dd   : > { %v1162_v53 = vpop.permute.xlu2 %1161  ;;  %v1185_v42 = vpop.permute.xlu1 %1184 }
 0x2de   : > { %v1169_v40 = vsel %vm1167_vm4, %v1162_v53, %v1164_v31  ;;  %v1170_v7 = vsel %vm1167_vm4, %v2827_v58, %v1162_v53  ;;  %p1920_p4 = pnand %p1919_p3, %p1915_p13 }
 0x2df   : > { %v1176_v26 = vmul.f32 %v2844_v14, %v1170_v7  ;;  %v1177_v47 = vmul.f32 %v2844_v14, %v1169_v40 }
 0x2e1   : > { %v1180_v30 = vadd.f32 %v1176_v26, %v1155_v10  ;;  %v1181_v39 = vadd.f32 %v1177_v47, %v1156_v15  ;;  %v1218_v15 = vsel %vm1217_vm6, %v2917_v4, %v1216_v32 }
 0x2e3   : > { %1409 = vperm.xlu1 %1854, %v1864_v43  }
 0x2e4   : > { %1349 = vrot.lane.b32.xlu2 %v1865_v49, %s2048_s17  ;;  %s1648_s17 = sshll.u32 %s2176_s7, 6 }
 0x2e5   : > { %v1241_v51 = vpop.permute.xlu2 %1240  ;;  %v1191_v58 = vpop.permute.xlu1 %1190 }
 0x2e6   : > { %v1193_v14 = vsel %vm1192_vm5, %v2900_v16, %v1191_v58  ;;  %v1196_v52 = vsel %vm1192_vm5, %v1191_v58, %v1185_v42 }
 0x2e7   : > { %v1203_v48 = vmul.f32 %v2908_v8, %v1193_v14  ;;  %v1204_v46 = vmul.f32 %v2908_v8, %v1196_v52  ;;  %v1262_v14 = vpop.permute.xlu0 %1261 }
 0x2e9   : > { %v1207_v59 = vadd.f32 %v1203_v48, %v1182_v38  ;;  %v1208_v60 = vadd.f32 %v1204_v46, %v1183_v41 }
 0x2eb   : > { %1855 = vset.pattern.permute.xlu1 %v1964_v0  ;;  %v1246_v0 = vsel %vm1242_vm7, %v1241_v51, %v2933_v19 }
 0x2ec   : > { %1399 = vrot.lane.b32.xlu2 %v1865_v49, %s2052_s23  ;;  %1423 = vperm.xlu1 %1855, %v1420_v50   ;;  %v1254_v33 = vmul.f32 %v1249_v61, %v1246_v0  ;;  %s242_s23 = scalar_lea.vmem [#allocation5], %s1648_s17 }
 0x2ed   : > { %v1260_v35 = vpop.permute.xlu2 %1259  ;;  %v1210_v1 = vpop.permute.xlu1 %1209  ;;  %s1564_s28 = sshll.u32 %s242_s23, 4  ;;  %s1565_s28 = int_to_ptr.vmem [resolvable:$true] %s1564_s28 }
 0x2ee   : > { %v1221_v2 = vsel %vm1217_vm6, %v1216_v32, %v1210_v1 }
 0x2f4   : > { %1441 = vperm.xlu1 %1855, %v1433_v9  }
 0x2f5   : > { %v1266_v11 = vpop.permute.xlu2 %1265  ;;  %v1224_v57 = vpop.permute.xlu1 %1223 }
 0x2f6   : > { %v1271_v17 = vsel %vm1267_vm8, %v1266_v11, %v1260_v35  ;;  %v1228_v10 = vmul.f32 %v1224_v57, %v1218_v15  ;;  %v1229_v23 = vmul.f32 %v1224_v57, %v1221_v2  ;;  %v1323_v2 = vpop.permute.xlu0 %1322 }
 0x2f7   : > { %v1279_v25 = vmul.f32 %v1274_v24, %v1271_v17 }
 0x2f8   : > { %v1233_v20 = vadd.f32 %v1229_v23, %v1208_v60  ;;  %v1232_v18 = vadd.f32 %v1228_v10, %v1207_v59  ;;  %v1270_v60 = vsel %vm1267_vm8, %v1260_v35, %v1262_v14 }
 0x2f9   : > { %v1276_v0 = vmul.f32 %v1274_v24, %v1270_v60 }
 0x2fa   : > { %v1258_v27 = vadd.f32 %v1254_v33, %v1233_v20 }
 0x2fc   : > { %v2969_v5 = vadd.f32 %v1279_v25, %v1258_v27 }
 0x2fd   : > { %v1239_v6 = vpop.permute.xlu1 %1238  ;;  %v1286_v41 = vpop.permute.xlu2 %1285 }
 0x2fe   : > { %v1243_v31 = vsel %vm1242_vm7, %v1239_v6, %v1241_v51  ;;  %v1346_v10 = vpop.permute.xlu0 %1345 }
 0x2ff   : > { %v1253_v56 = vmul.f32 %v1249_v61, %v1243_v31 }
 0x301   : > { %v1257_v3 = vadd.f32 %v1253_v56, %v1232_v18 }
 0x305   : > { %v1187_v32 = vpop.permute.xlu1 %1186 }
 0x306   : > { %v1194_v38 = vsel %vm1192_vm5, %v1187_v32, %v2900_v16  ;;  %v1195_v36 = vsel %vm1192_vm5, %v1185_v42, %v1187_v32  ;;  %v1298_v40 = vpop.permute.xlu2 %1297  ;;  %v2998_v35 = vpop.permute.xlu0 %1359  ;;  %v1291_v32 = vmul.f32 %v1286_v41, %v2323_v21 }
 0x307   : > { %v1201_v37 = vmul.f32 %v2908_v8, %v1195_v36  ;;  %v1202_v53 = vmul.f32 %v2908_v8, %v1194_v38  ;;  %v1288_v38 = vmul.f32 %v1286_v41, %v2338_v29  ;;  %v1290_v36 = vmul.f32 %v1286_v41, %v2328_v22 }
 0x309   : > { %v1205_v7 = vadd.f32 %v1201_v37, %v1180_v30  ;;  %v1206_v26 = vadd.f32 %v1202_v53, %v1181_v39  ;;  %v1289_v53 = vmul.f32 %v1286_v41, %v2333_v28 }
 0x30d   : > { %v1264_v47 = vpop.permute.xlu1 %1263 }
 0x30e   : > { %v1268_v43 = vsel %vm1267_vm8, %v1264_v47, %v1266_v11  ;;  %v1321_v58 = vpop.permute.xlu2 %1320  ;;  %v1325_v27 = vpop.permute.xlu0 %1324 }
 0x30f   : > { %v1278_v49 = vmul.f32 %v1274_v24, %v1268_v43  ;;  %v1300_v43 = vmul.f32 %v1298_v40, %v2370_v55  ;;  %v1331_v21 = vsel %vm1328_vm9, %v1321_v58, %v1323_v2  ;;  %v1330_v55 = vsel %vm1328_vm9, %v1323_v2, %v1325_v27 }
 0x311   : > { %v1282_v51 = vadd.f32 %v1278_v49, %v1257_v3  ;;  %v1302_v49 = vmul.f32 %v1298_v40, %v2356_v45  ;;  %v1432_v45 = vld [vmem:[%s3106_s4] sm:$0xff] }
 0x312   : > { %1436 = vperm.xlu0 %1856, %v1432_v45  }
 0x315   : > { %v1212_v52 = vpop.permute.xlu1 %1211 }
 0x316   : > { %v1219_v16 = vsel %vm1217_vm6, %v1212_v52, %v2917_v4  ;;  %v1220_v42 = vsel %vm1217_vm6, %v1210_v1, %v1212_v52  ;;  %v2987_v46 = vpop.permute.xlu2 %1334  ;;  %v3006_v56 = vpop.permute.xlu0 %1401 }
 0x317   : > { %v1226_v8 = vmul.f32 %v1224_v57, %v1220_v42  ;;  %v1227_v48 = vmul.f32 %v1224_v57, %v1219_v16 }
 0x319   : > { %v1230_v30 = vadd.f32 %v1226_v8, %v1205_v7  ;;  %v1231_v39 = vadd.f32 %v1227_v48, %v1206_v26  ;;  %v1303_v7 = vmul.f32 %v1298_v40, %v2351_v44  ;;  %v1294_v26 = vadd.f32 %v1290_v36, %v1282_v51 }
 0x31a   : > { %v1301_v44 = vmul.f32 %v1298_v40, %v2365_v54 }
 0x31b   : > { %v1306_v52 = vadd.f32 %v1302_v49, %v1294_v26 }
 0x31d   : > { %v1237_v59 = vpop.permute.xlu1 %1236 }
 0x31e   : > { %v1244_v50 = vsel %vm1242_vm7, %v1237_v59, %v1239_v6  ;;  %v1245_v4 = vsel %vm1242_vm7, %v2933_v19, %v1237_v59  ;;  %v1352_v17 = vpop.permute.xlu2 %1351 }
 0x31f   : > { %v1251_v9 = vmul.f32 %v1249_v61, %v1245_v4  ;;  %v1252_v1 = vmul.f32 %v1249_v61, %v1244_v50  ;;  %v1269_v61 = vsel %vm1267_vm8, %v1262_v14, %v1264_v47  ;;  %v1357_v54 = vsel %vm1353_vm10, %v1352_v17, %v1346_v10 }
 0x320   : > { %v1277_v31 = vmul.f32 %v1274_v24, %v1269_v61  ;;  %v1295_v24 = vadd.f32 %v1291_v32, %v2969_v5  ;;  %v1364_v50 = vmul.f32 %v2998_v35, %v1357_v54 }
 0x321   : > { %v1255_v11 = vadd.f32 %v1251_v9, %v1230_v30  ;;  %v1256_v15 = vadd.f32 %v1252_v1, %v1231_v39  ;;  %v1375_v30 = vpop.permute.xlu0 %1374  ;;  %v1337_v39 = vmul.f32 %v2987_v46, %v1330_v55 }
 0x322   : > { %v1307_v5 = vadd.f32 %v1303_v7, %v1295_v24 }
 0x323   : > { %v1280_v57 = vadd.f32 %v1276_v0, %v1255_v11  ;;  %v1281_v37 = vadd.f32 %v1277_v31, %v1256_v15 }
 0x325   : > { %v1310_v33 = vpop.permute.xlu1 %1309  ;;  %v1292_v47 = vadd.f32 %v1288_v38, %v1280_v57  ;;  %v1293_v22 = vadd.f32 %v1289_v53, %v1281_v37 }
 0x326   : > { %v2996_v20 = vpop.permute.xlu2 %1372  ;;  %v1315_v29 = vmul.f32 %v1310_v33, %v2381_v62  ;;  %v1314_v41 = vmul.f32 %v1310_v33, %v2385_v63  ;;  %v1312_v51 = vmul.f32 %v1310_v33, %v2398_v13  ;;  %v1313_v63 = vmul.f32 %v1310_v33, %v2393_v12 }
 0x327   : > { %v1304_v14 = vadd.f32 %v1300_v43, %v1292_v47  ;;  %v1305_v8 = vadd.f32 %v1301_v44, %v1293_v22  ;;  %v1380_v0 = vsel %vm1378_vm11, %v2996_v20, %v1375_v30 }
 0x328   : > { %v1319_v42 = vadd.f32 %v1315_v29, %v1307_v5  ;;  %v1318_v59 = vadd.f32 %v1314_v41, %v1306_v52 }
 0x329   : > { %v1316_v12 = vadd.f32 %v1312_v51, %v1304_v14  ;;  %v1317_v11 = vadd.f32 %v1313_v63, %v1305_v8 }
 0x32d   : > { %v1327_v23 = vpop.permute.xlu1 %1326 }
 0x32e   : > { %v3000_v18 = vpop.permute.xlu2 %1384  ;;  %v1332_v28 = vsel %vm1328_vm9, %v1327_v23, %v1321_v58  ;;  %v1340_v58 = vmul.f32 %v2987_v46, %v1331_v21  ;;  %v1329_v48 = vsel %vm1328_vm9, %v1325_v27, %v1327_v23  ;;  %v1341_v27 = vadd.f32 %v1337_v39, %v1316_v12 }
 0x32f   : > { %v1339_v40 = vmul.f32 %v2987_v46, %v1332_v28  ;;  %v1338_v2 = vmul.f32 %v2987_v46, %v1329_v48 }
 0x330   : > { %v1344_v15 = vadd.f32 %v1340_v58, %v1319_v42 }
 0x331   : > { %v1343_v9 = vadd.f32 %v1339_v40, %v1318_v59  ;;  %v1342_v31 = vadd.f32 %v1338_v2, %v1317_v11 }
 0x333   : > { %v1368_v36 = vadd.f32 %v1364_v50, %v1343_v9 }
 0x335   : > { %v1348_v25 = vpop.permute.xlu1 %1347 }
 0x336   : > { %v3004_v6 = vpop.permute.xlu2 %1397  ;;  %v1356_v13 = vsel %vm1353_vm10, %v1346_v10, %v1348_v25 }
 0x337   : > { %v1365_v1 = vmul.f32 %v2998_v35, %v1356_v13 }
 0x339   : > { %v1369_v32 = vadd.f32 %v1365_v1, %v1344_v15 }
 0x33d   : > { %v1371_v19 = vpop.permute.xlu1 %1370 }
 0x33e   : > { %v1350_v62 = vpop.permute.xlu2 %1349  ;;  %v1381_v33 = vsel %vm1378_vm11, %v1371_v19, %v2996_v20 }
 0x33f   : > { %v1355_v60 = vsel %vm1353_vm10, %v1348_v25, %v1350_v62  ;;  %v1354_v4 = vsel %vm1353_vm10, %v1350_v62, %v1352_v17  ;;  %v1387_v17 = vmul.f32 %v3000_v18, %v1380_v0  ;;  %v1390_v37 = vmul.f32 %v3000_v18, %v1381_v33 }
 0x340   : > { %v1362_v57 = vmul.f32 %v2998_v35, %v1355_v60  ;;  %v1363_v10 = vmul.f32 %v2998_v35, %v1354_v4 }
 0x341   : > { %v1394_v29 = vadd.f32 %v1390_v37, %v1369_v32 }
 0x342   : > { %v1366_v53 = vadd.f32 %v1362_v57, %v1341_v27 }
 0x344   : > { %v1391_v49 = vadd.f32 %v1387_v17, %v1366_v53 }
 0x345   : > { %v1377_v3 = vpop.permute.xlu1 %1376 }
 0x346   : > { %v1379_v23 = vsel %vm1378_vm11, %v1375_v30, %v1377_v3  ;;  %v1382_v25 = vsel %vm1378_vm11, %v1377_v3, %v1371_v19  ;;  %v1400_v46 = vpop.permute.xlu2 %1399  ;;  %v1367_v19 = vadd.f32 %v1363_v10, %v1342_v31 }
 0x347   : > { %v1404_v38 = vsel %vm1403_vm12, %v1400_v46, %v3006_v56  ;;  %v1388_v20 = vmul.f32 %v3000_v18, %v1379_v23  ;;  %v1389_v35 = vmul.f32 %v3000_v18, %v1382_v25  ;;  %v1405_v34 = vsel %vm1403_vm12, %v3004_v6, %v1400_v46 }
 0x349   : > { %v1392_v21 = vadd.f32 %v1388_v20, %v1367_v19  ;;  %v1393_v22 = vadd.f32 %v1389_v35, %v1368_v36 }
 0x34d   : > { %v1396_v16 = vpop.permute.xlu1 %1395 }
 0x34e   : > { %v1406_v3 = vsel %vm1403_vm12, %v1396_v16, %v3004_v6  ;;  %v1407_v7 = vsel %vm1403_vm12, %v3006_v56, %v1396_v16  ;;  %v1430_v6 = vld [vmem:[%s3105_s3] sm:$0xff]  ;;  %v1431_v56 = vld [vmem:[%s3105_s3 + $0x8] sm:$0xff] }
 0x355   : > { %v1410_v61 = vpop.permute.xlu1 %1409 }
 0x356   : > { %v1412_v26 = vmul.f32 %v1410_v61, %v1405_v34  ;;  %v1413_v47 = vmul.f32 %v1410_v61, %v1404_v38  ;;  %v1414_v24 = vmul.f32 %v1410_v61, %v1407_v7  ;;  %v1415_v43 = vmul.f32 %v1410_v61, %v1406_v3 }
 0x358   : > { %v1416_v28 = vadd.f32 %v1412_v26, %v1391_v49  ;;  %v1417_v44 = vadd.f32 %v1413_v47, %v1392_v21  ;;  %v1418_v41 = vadd.f32 %v1414_v24, %v1393_v22  ;;  %v1419_v55 = vadd.f32 %v1415_v43, %v1394_v29 }
 0x35e   : > { %v1424_v18 = vpop.permute.xlu1 %1423 }
 0x35f   : > { %v1426_v45 = vadd.f32 %v1424_v18, %v1416_v28  ;;  %v1427_v5 = vadd.f32 %v1424_v18, %v1417_v44  ;;  %v1428_v51 = vadd.f32 %v1424_v18, %v1418_v41  ;;  %v1429_v14 = vadd.f32 %v1424_v18, %v1419_v55 }
 0x361   : > { %1466 = vmatpush.msra.mxu0 %v1426_v45  ;;  %1489 = vmatpush.msra.mxu1 %v1427_v5 }
 0x362   : > { %1512 = vmatpush.msra.mxu2 %v1428_v51  ;;  %1535 = vmatpush.msra.mxu3 %v1429_v14 }
 0x363   : > { %1649 = vmatmul.msk.f32.vlgmr.msra.gmra.mxu0 %vm1444_vm13, %v1430_v6  ;;  %1651 = vmatmul.msk.f32.vlgmr.msra.gmra.mxu1 %vm1444_vm13, %v1430_v6 }
 0x364   : > { %1653 = vmatmul.msk.f32.vlgmr.msra.gmra.mxu2 %vm1444_vm13, %v1430_v6  ;;  %1655 = vmatmul.msk.f32.vlgmr.msra.gmra.mxu3 %vm1444_vm13, %v1430_v6 }
 0x366   : > { %v1442_v63 = vpop.permute.xlu1 %1441 }
 0x36b   : > { %1650 = vmatmul.msk.f32.gmra.mxu0 %vm1444_vm13, %v1431_v56  ;;  %1652 = vmatmul.msk.f32.gmra.mxu1 %vm1444_vm13, %v1431_v56 }
 0x36c   : > { %1654 = vmatmul.msk.f32.gmra.mxu2 %vm1444_vm13, %v1431_v56  ;;  %1656 = vmatmul.msk.f32.gmra.mxu3 %vm1444_vm13, %v1431_v56 }
 0x384   : > { %v1437_v52 = vpop.permute.xlu0 %1436 }
 0x3e0   : > { %v1468_v62 = vpop.f32.mrf.mxu0  ;;  %v1491_v16 = vpop.f32.mrf.mxu1 }
 0x3e1   : > { %v1469_v58 = vadd.f32 %v1468_v62, %v1437_v52  ;;  %v1492_v54 = vadd.f32 %v1491_v16, %v1437_v52 }
 0x3e3   : > { %1543 = vst [vmem:[%s242_s23] sm:$0xff] %v1469_v58 }
 0x3e4   : > { %1544 = vst [vmem:[%s242_s23 + $0x8] sm:$0xff] %v1492_v54 }
 0x3e7   : > { %v1514_v40 = vpop.f32.mrf.mxu2  ;;  %v1537_v42 = vpop.f32.mrf.mxu3 }
 0x3e8   : > { %v1515_v8 = vadd.f32 %v1514_v40, %v1437_v52  ;;  %v1538_v48 = vadd.f32 %v1537_v42, %v1437_v52  ;;  %v1471_v13 = vpop.f32.mrf.mxu0  ;;  %v1494_v30 = vpop.f32.mrf.mxu1 }
 0x3e9   : > { %v1472_v39 = vadd.f32 %v1471_v13, %v1442_v63  ;;  %v1495_v59 = vadd.f32 %v1494_v30, %v1442_v63 }
 0x3ea   : > { %1545 = vst [vmem:[%s242_s23 + $0x10] sm:$0xff] %v1515_v8 }
 0x3eb   : > { %1546 = vst [vmem:[%s242_s23 + $0x18] sm:$0xff] %v1538_v48 }
 0x3ec   : > { %1547 = vst [vmem:[%s242_s23 + $0x20] sm:$0xff] %v1472_v39 }
 0x3ed   : > { %1548 = vst [vmem:[%s242_s23 + $0x28] sm:$0xff] %v1495_v59 }
 0x3ef   : > { %v1517_v60 = vpop.f32.mrf.mxu2  ;;  %v1540_v50 = vpop.f32.mrf.mxu3 }
 0x3f0   : > { %v1518_v12 = vadd.f32 %v1517_v60, %v1442_v63  ;;  %v1541_v4 = vadd.f32 %v1540_v50, %v1442_v63 }
 0x3f2   : > { %1549 = vst [vmem:[%s242_s23 + $0x30] sm:$0xff] %v1518_v12 }
 0x3f3   : > { %1550 = vst [vmem:[%s242_s23 + $0x38] sm:$0xff] %v1541_v4 }
 0x3f4   : > { %1923 = shalt.err (!%p1920_p4)
}
 0x3f5   : > { %s2058_s7 = smov 512   ;;  %s2059_s17 = smov 32  }
 0x3f6   : > { %1666 = dma.vmem_to_hbm [thread:$0]  (%p2140_p11), %s1565_s28, 1024, %s1567_s9, %s1552_s22, %s2058_s7, %s2058_s7, %s2059_s17  }
 0x3f7 PF: > { %s1581_s23 = sand.u32 1, %s1950_s18   ;;  %p3113_p7 = scmp.ge.s32.totalorder %s1962_s21, 2 }
 0x3f8   : > { %s1582_s25 = scalar_lea.sflag [#allocation4], %s1581_s23 }
 0x3f9   : > { %p1673_p5 = pnand %p3113_p7, %p2144_p12 }
 0x3fb   : > { %p1674_p8 = pneg %p1673_p5 }
 0x3fd   : > { %1945 = dma.done.wait (%p1674_p8), %s1582_s25, 1024  }
 0x3fe   : > { %1947 = vsyncadd (%p1674_p8), %s1582_s25, 4294966272  ;;  %p18_p10 = scmp.ge.s32.totalorder %s2115_s24, 4   ;;  %s3114_s18 = smov %s1954_s19 }
 0x3ff   : > { %s3115_s19 = smov %s1958_s20  ;;  %s3116_s20 = smov %s2127_s27 }
 0x400   : > { %s3117_s21 = smov %s2115_s24  ;;  %20 = sbr.rel (!%p18_p10) target bundleno = 5 (0x5), region = 85 }
 0x405   :  { %1588 = vsyncpa [#allocation3], 1 }
 0x406   :  { %1590 = vsyncpa [#allocation3 + $0x1], 1 }
 0x407   :  { %1591 = vsyncpa [#allocation4], 1 }
 0x408   :  { %1593 = vsyncpa [#allocation4 + $0x1], 1 }

</bundles_post_ra>
